<compile_context>
chip_gen: v6e
topology: v6e:2x2x1
jax: 0.10.0
libtpu: 0.0.40
codegen_flags: <defaults>
</compile_context>

<pallas_src>
import functools
import math

import jax
import jax.numpy as jnp
import numpy as np
from jax.experimental import pallas as pl
from jax.experimental.pallas import tpu as pltpu


# ---------------------------------------------------------------------------
# Kernel helpers
# ---------------------------------------------------------------------------
def _normalize_factors(h, K, d_f, eps=1e-12):
    """L2-normalize over the K factor blocks of a flat (N, K*d_f) array
    (== torch F.normalize(x, dim=1) on the (N, K, d_f) view)."""
    blocks = [h[:, k * d_f:(k + 1) * d_f] for k in range(K)]
    sumsq = blocks[0] * blocks[0]
    for k in range(1, K):
        sumsq = sumsq + blocks[k] * blocks[k]
    inv = pl.reciprocal(jnp.maximum(jnp.sqrt(sumsq), eps), approx=True)  # EUP
    # One lane concat + one full-width (lane-dense) result.
    return jnp.concatenate([blk * inv for blk in blocks], axis=1)


def _dines_fused_kernel(x_ref, w0_ref, b0_ref, ap_ref, an_ref, wc_ref, bc_ref,
                        o_ref, f_ref, *, K, d_f):
    """Fused DINES encoder.

    Grid step 0   : init disentangling layer  f0 = norm(tanh(X @ W_cat + b0))
    Grid step l>0 : SDNConv layer l-1 on the resident f scratch buffer.
    Last step     : write f to the output.

    Shapes:
      x : (N, D) f32            w0: (D, K*d_f) f32        b0: (1, K*d_f) f32
      ap/an: (N, N) bf16 dense signed adjacencies (loaded once, resident)
      wc: (L, 5*K*d_f, K*d_f) f32 block-diagonal per-layer mixing weights
      bc: (L, 1, K*d_f) f32     o : (N, K*d_f) f32         f : VMEM scratch
    """
    step = pl.program_id(0)

    @pl.when(step == 0)
    def _init_layer():
        h = jnp.dot(x_ref[...], w0_ref[...], preferred_element_type=jnp.float32)
        h = jnp.tanh(h + b0_ref[...])
        f_ref[...] = _normalize_factors(h, K, d_f)

    @pl.when(step > 0)
    def _conv_layer():
        l = step - 1
        f = f_ref[...]                        # (N, K*d_f) f32
        fb = f.astype(jnp.bfloat16)           # bf16 operand for the MXU
        ap = ap_ref[...]                      # (N, N) bf16
        an = an_ref[...]

        nn = (((1,), (0,)), ((), ()))         # A   @ F  (out-neighbors)
        tn = (((0,), (0,)), ((), ()))         # A^T @ F  (in-neighbors, no A^T copy)
        m_p_out = jax.lax.dot_general(ap, fb, nn, preferred_element_type=jnp.float32)
        m_p_in = jax.lax.dot_general(ap, fb, tn, preferred_element_type=jnp.float32)
        m_n_out = jax.lax.dot_general(an, fb, nn, preferred_element_type=jnp.float32)
        m_n_in = jax.lax.dot_general(an, fb, tn, preferred_element_type=jnp.float32)

        # Single wide concat + single block-diagonal matmul for all K factors.
        m_cat = jnp.concatenate([m_p_out, m_p_in, f, m_n_out, m_n_in], axis=1)
        w = wc_ref[l]                         # (5*K*d_f, K*d_f)
        b = bc_ref[l]                         # (1, K*d_f)
        h = jnp.tanh(jnp.dot(m_cat, w, preferred_element_type=jnp.float32) + b)
        f_ref[...] = _normalize_factors(h, K, d_f)

    @pl.when(step == pl.num_programs(0) - 1)
    def _write_out():
        o_ref[...] = f_ref[...]               # one lane-dense store


# ---------------------------------------------------------------------------
# Host-side glue: adjacency build, weight re-layout, pallas_call plumbing
# ---------------------------------------------------------------------------
def build_adjacency(E, N):
    """Dense adjacency with edge multiplicity: A[s, d] = #edges s->d."""
    return jnp.zeros((N, N), jnp.float32).at[E[:, 0], E[:, 1]].add(1.0)


def _block_diag_weight(W, K, d_f):
    """Torch per-factor weights (K, 5*d_f, d_f) -> one (5*K*d_f, K*d_f)
    block-diagonal matrix matching the flat layout
    [m_p_out | m_p_in | f | m_n_out | m_n_in] with factor-major blocks."""
    Wr = W.reshape(K, 5, d_f, d_f)
    eye = jnp.eye(K, dtype=W.dtype)
    # Wb[p, k', i, k, l] = Wr[k, p, i, l] * delta(k, k')
    Wb = jnp.einsum("kpil,km->pmikl", Wr, eye)
    return Wb.reshape(5 * K * d_f, K * d_f)


def dines_encoder_pallas(X, Ep, En, params, *, K, d_f):
    N, D = X.shape
    Fd = K * d_f
    L = len(params["convs"])

    # bf16 adjacencies: exact for integer edge counts <= 256, halves HBM/VMEM.
    Ap = build_adjacency(Ep, N).astype(jnp.bfloat16)
    An = build_adjacency(En, N).astype(jnp.bfloat16)

    # einsum 'ij,kjl->ikl' == X @ W_cat with W_cat[j, k*d_f + l] = W0[k, j, l]
    W_cat = jnp.transpose(params["init_W"], (1, 0, 2)).reshape(D, Fd)
    b0 = params["init_b"].reshape(1, Fd)
    Wc = jnp.stack([_block_diag_weight(W, K, d_f) for (W, _) in params["convs"]])
    bc = jnp.stack([b.reshape(1, Fd) for (_, b) in params["convs"]])

    kernel = functools.partial(_dines_fused_kernel, K=K, d_f=d_f)

    # Explicit VMEM budget: everything resident + generous headroom.
    adj_bytes = 2 * N * N * 2
    dense_bytes = 4 * (N * D + D * Fd + Fd + L * 5 * Fd * Fd + L * Fd
                       + 8 * N * Fd + N * 5 * Fd)
    vmem_limit = int(min(64 * 1024 * 1024,
                         max(8 * 1024 * 1024, 4 * (adj_bytes + dense_bytes))))

    const2 = lambda i: (0, 0)
    const3 = lambda i: (0, 0, 0)

    out = pl.pallas_call(
        kernel,
        out_shape=jax.ShapeDtypeStruct((N, Fd), jnp.float32),
        grid=(L + 1,),
        in_specs=[
            pl.BlockSpec((N, D), const2),             # X          (resident)
            pl.BlockSpec((D, Fd), const2),            # W_cat      (resident)
            pl.BlockSpec((1, Fd), const2),            # b0         (resident)
            pl.BlockSpec((N, N), const2),             # Ap  bf16   (loaded once)
            pl.BlockSpec((N, N), const2),             # An  bf16   (loaded once)
            pl.BlockSpec((L, 5 * Fd, Fd), const3),    # conv weights (stacked)
            pl.BlockSpec((L, 1, Fd), const3),         # conv biases  (stacked)
        ],
        out_specs=pl.BlockSpec((N, Fd), const2),
        scratch_shapes=[pltpu.VMEM((N, Fd), jnp.float32)],   # running f
        compiler_params=pltpu.CompilerParams(
            dimension_semantics=("arbitrary",),   # layers are sequential
            vmem_limit_bytes=vmem_limit,
        ),
    )(X.astype(jnp.float32), W_cat, b0, Ap, An, Wc, bc)

    return out.reshape(N, K, d_f)   # Z, matches torch (N, K, d_out/K)


# ---------------------------------------------------------------------------
# Pure-JAX reference (mirrors the PyTorch forward exactly)
# ---------------------------------------------------------------------------
def _normalize_dim1(x, eps=1e-12):
    n = jnp.sqrt(jnp.sum(x * x, axis=1, keepdims=True))
    return x / jnp.maximum(n, eps)


def dines_encoder_ref(X, Ep, En, params):
    f = jnp.einsum("ij,kjl->ikl", X, params["init_W"]) + params["init_b"]
    f = _normalize_dim1(jnp.tanh(f))
    for (W, b) in params["convs"]:
        zeros = jnp.zeros_like(f)
        m_p_out = zeros.at[Ep[:, 0]].add(f[Ep[:, 1]])
        m_p_in = zeros.at[Ep[:, 1]].add(f[Ep[:, 0]])
        m_n_out = zeros.at[En[:, 0]].add(f[En[:, 1]])
        m_n_in = zeros.at[En[:, 1]].add(f[En[:, 0]])
        m_cat = jnp.concatenate([m_p_out, m_p_in, f, m_n_out, m_n_in], axis=2)
        f = jnp.einsum("ijk,jkl->ijl", m_cat, W) + b
        f = _normalize_dim1(jnp.tanh(f))
    return f


# ---------------------------------------------------------------------------
# Main
# ---------------------------------------------------------------------------
if __name__ == "__main__":
    # InitDisenLayer's einsum requires d_in == d_out; pick them equal.
    N, D_IN, D_OUT, K, L = 64, 32, 32, 4, 2
    d_f = D_OUT // K
    E_POS = E_NEG = 96

    key = jax.random.PRNGKey(0)
    kx, kep, ken, kw0, kb0, *kc = jax.random.split(key, 5 + 2 * L)

    X = jax.random.normal(kx, (N, D_IN), dtype=jnp.float32)
    Ep = jax.random.randint(kep, (E_POS, 2), 0, N, dtype=jnp.int32)
    En = jax.random.randint(ken, (E_NEG, 2), 0, N, dtype=jnp.int32)

    bound0 = math.sqrt(6.0 / (D_IN + d_f))
    params = {
        "init_W": jax.random.uniform(kw0, (K, D_OUT, D_IN // K),
                                     minval=-bound0, maxval=bound0,
                                     dtype=jnp.float32),
        "init_b": 0.1 * jax.random.normal(kb0, (1, K, D_IN // K),
                                          dtype=jnp.float32),
        "convs": [],
    }
    bound_c = math.sqrt(6.0 / (5 * d_f + d_f))
    for l in range(L):
        Wl = jax.random.uniform(kc[2 * l], (K, 5 * D_OUT // K, D_OUT // K),
                                minval=-bound_c, maxval=bound_c,
                                dtype=jnp.float32)
        bl = 0.1 * jax.random.normal(kc[2 * l + 1], (1, K, D_OUT // K),
                                     dtype=jnp.float32)
        params["convs"].append((Wl, bl))

    Z = dines_encoder_pallas(X, Ep, En, params, K=K, d_f=d_f)
    Z = jax.block_until_ready(Z)

    Z_ref = jax.block_until_ready(dines_encoder_ref(X, Ep, En, params))
    np.testing.assert_allclose(np.asarray(Z), np.asarray(Z_ref),
                               rtol=2e-2, atol=2e-2)

    print("KERNEL_OK")
</pallas_src>

<mosaic_0001>
module attributes {stable_mosaic.version = 11 : i64} {
  func.func @_dines_fused_kernel(%arg0: i32, %arg1: memref<64x32xf32, #tpu.memory_space<vmem>>, %arg2: memref<32x32xf32, #tpu.memory_space<vmem>>, %arg3: memref<1x32xf32, #tpu.memory_space<vmem>>, %arg4: memref<64x64xbf16, #tpu.memory_space<vmem>>, %arg5: memref<64x64xbf16, #tpu.memory_space<vmem>>, %arg6: memref<2x160x32xf32, #tpu.memory_space<vmem>>, %arg7: memref<2x1x32xf32, #tpu.memory_space<vmem>>, %arg8: memref<64x32xf32, #tpu.memory_space<vmem>>, %arg9: memref<64x32xf32, #tpu.memory_space<vmem>>) attributes {dimension_semantics = [#tpu.dimension_semantics<arbitrary>], iteration_bounds = array<i64: 3>, scalar_prefetch = 0 : i64, scratch_operands = 1 : i64, tpu.core_type = #tpu.core_type<tc>, window_params = [{pipeline_mode = #tpu.pipeline_mode<synchronous>, transform_indices = @transform_0, window_bounds = array<i64: 64, 32>}, {pipeline_mode = #tpu.pipeline_mode<synchronous>, transform_indices = @transform_1, window_bounds = array<i64: 32, 32>}, {pipeline_mode = #tpu.pipeline_mode<synchronous>, transform_indices = @transform_2, window_bounds = array<i64: 1, 32>}, {pipeline_mode = #tpu.pipeline_mode<synchronous>, transform_indices = @transform_3, window_bounds = array<i64: 64, 64>}, {pipeline_mode = #tpu.pipeline_mode<synchronous>, transform_indices = @transform_4, window_bounds = array<i64: 64, 64>}, {pipeline_mode = #tpu.pipeline_mode<synchronous>, transform_indices = @transform_5, window_bounds = array<i64: 2, 160, 32>}, {pipeline_mode = #tpu.pipeline_mode<synchronous>, transform_indices = @transform_6, window_bounds = array<i64: 2, 1, 32>}, {pipeline_mode = #tpu.pipeline_mode<synchronous>, transform_indices = @transform_7, window_bounds = array<i64: 64, 32>}]} {
    %c0_i32 = arith.constant 0 : i32
    %0 = arith.cmpi eq, %arg0, %c0_i32 : i32
    %1 = arith.extui %0 : i1 to i32
    %c0_i32_0 = arith.constant 0 : i32
    %2 = arith.cmpi ne, %1, %c0_i32_0 : i32
    scf.if %2 {
      %c0 = arith.constant 0 : index
      %c0_4 = arith.constant 0 : index
      %9 = vector.load %arg1[%c0, %c0_4] : memref<64x32xf32, #tpu.memory_space<vmem>>, vector<64x32xf32>
      %c0_5 = arith.constant 0 : index
      %c0_6 = arith.constant 0 : index
      %10 = vector.load %arg2[%c0_5, %c0_6] : memref<32x32xf32, #tpu.memory_space<vmem>>, vector<32x32xf32>
      %cst = arith.constant dense<0.000000e+00> : vector<64x32xf32>
      %11 = tpu.matmul %9, %10, %cst {dimension_numbers = #tpu.dot_dimension_numbers<[1], [0], [0], [1], [0, 0, 1, 1], [], []>} : vector<64x32xf32>, vector<32x32xf32>, vector<64x32xf32> -> vector<64x32xf32>
      %c0_7 = arith.constant 0 : index
      %c0_8 = arith.constant 0 : index
      %12 = vector.load %arg3[%c0_7, %c0_8] : memref<1x32xf32, #tpu.memory_space<vmem>>, vector<1x32xf32>
      %13 = vector.broadcast %12 : vector<1x32xf32> to vector<64x32xf32>
      %14 = arith.addf %11, %13 : vector<64x32xf32>
      %15 = math.tanh %14 : vector<64x32xf32>
      %16 = vector.extract_strided_slice %15 {offsets = [0, 0], sizes = [64, 8], strides = [1, 1]} : vector<64x32xf32> to vector<64x8xf32>
      %17 = vector.extract_strided_slice %15 {offsets = [0, 8], sizes = [64, 8], strides = [1, 1]} : vector<64x32xf32> to vector<64x8xf32>
      %18 = vector.extract_strided_slice %15 {offsets = [0, 16], sizes = [64, 8], strides = [1, 1]} : vector<64x32xf32> to vector<64x8xf32>
      %19 = vector.extract_strided_slice %15 {offsets = [0, 24], sizes = [64, 8], strides = [1, 1]} : vector<64x32xf32> to vector<64x8xf32>
      %20 = arith.mulf %16, %16 : vector<64x8xf32>
      %21 = arith.mulf %17, %17 : vector<64x8xf32>
      %22 = arith.addf %20, %21 : vector<64x8xf32>
      %23 = arith.mulf %18, %18 : vector<64x8xf32>
      %24 = arith.addf %22, %23 : vector<64x8xf32>
      %25 = arith.mulf %19, %19 : vector<64x8xf32>
      %26 = arith.addf %24, %25 : vector<64x8xf32>
      %27 = math.sqrt %26 : vector<64x8xf32>
      %cst_9 = arith.constant 9.99999996E-13 : f32
      %28 = vector.broadcast %cst_9 : f32 to vector<64x8xf32>
      %29 = arith.maximumf %27, %28 : vector<64x8xf32>
      %30 = tpu.reciprocal %29 {approx = true} : vector<64x8xf32> -> vector<64x8xf32>
      %31 = arith.mulf %16, %30 : vector<64x8xf32>
      %32 = arith.mulf %17, %30 : vector<64x8xf32>
      %33 = arith.mulf %18, %30 : vector<64x8xf32>
      %34 = arith.mulf %19, %30 : vector<64x8xf32>
      %35 = tpu.concatenate %31, %32, %33, %34 in 1 : vector<64x8xf32>, vector<64x8xf32>, vector<64x8xf32>, vector<64x8xf32> -> vector<64x32xf32>
      %c0_10 = arith.constant 0 : index
      %c0_11 = arith.constant 0 : index
      %36 = vector.load %arg9[%c0_10, %c0_11] : memref<64x32xf32, #tpu.memory_space<vmem>>, vector<64x32xf32>
      tpu.vector_store %arg9[%c0_10, %c0_11], %35 {strides = array<i32>} : memref<64x32xf32, #tpu.memory_space<vmem>>, vector<64x32xf32>,
    } else {
    }
    %c0_i32_1 = arith.constant 0 : i32
    %3 = arith.cmpi sgt, %arg0, %c0_i32_1 : i32
    %4 = arith.extui %3 : i1 to i32
    %c0_i32_2 = arith.constant 0 : i32
    %5 = arith.cmpi ne, %4, %c0_i32_2 : i32
    scf.if %5 {
      %c1_i32 = arith.constant 1 : i32
      %9 = arith.subi %arg0, %c1_i32 : i32
      %c0 = arith.constant 0 : index
      %c0_4 = arith.constant 0 : index
      %10 = vector.load %arg9[%c0, %c0_4] : memref<64x32xf32, #tpu.memory_space<vmem>>, vector<64x32xf32>
      %11 = arith.truncf %10 : vector<64x32xf32> to vector<64x32xbf16>
      %c0_5 = arith.constant 0 : index
      %c0_6 = arith.constant 0 : index
      %12 = vector.load %arg4[%c0_5, %c0_6] : memref<64x64xbf16, #tpu.memory_space<vmem>>, vector<64x64xbf16>
      %c0_7 = arith.constant 0 : index
      %c0_8 = arith.constant 0 : index
      %13 = vector.load %arg5[%c0_7, %c0_8] : memref<64x64xbf16, #tpu.memory_space<vmem>>, vector<64x64xbf16>
      %cst = arith.constant dense<0.000000e+00> : vector<64x32xf32>
      %14 = tpu.matmul %12, %11, %cst {dimension_numbers = #tpu.dot_dimension_numbers<[1], [0], [0], [1], [0, 0, 1, 1], [], []>} : vector<64x64xbf16>, vector<64x32xbf16>, vector<64x32xf32> -> vector<64x32xf32>
      %cst_9 = arith.constant dense<0.000000e+00> : vector<64x32xf32>
      %15 = tpu.matmul %12, %11, %cst_9 {dimension_numbers = #tpu.dot_dimension_numbers<[0], [0], [1], [1], [0, 1, 1, 1], [], []>} : vector<64x64xbf16>, vector<64x32xbf16>, vector<64x32xf32> -> vector<64x32xf32>
      %cst_10 = arith.constant dense<0.000000e+00> : vector<64x32xf32>
      %16 = tpu.matmul %13, %11, %cst_10 {dimension_numbers = #tpu.dot_dimension_numbers<[1], [0], [0], [1], [0, 0, 1, 1], [], []>} : vector<64x64xbf16>, vector<64x32xbf16>, vector<64x32xf32> -> vector<64x32xf32>
      %cst_11 = arith.constant dense<0.000000e+00> : vector<64x32xf32>
      %17 = tpu.matmul %13, %11, %cst_11 {dimension_numbers = #tpu.dot_dimension_numbers<[0], [0], [1], [1], [0, 1, 1, 1], [], []>} : vector<64x64xbf16>, vector<64x32xbf16>, vector<64x32xf32> -> vector<64x32xf32>
      %18 = tpu.concatenate %14, %15, %10, %16, %17 in 1 : vector<64x32xf32>, vector<64x32xf32>, vector<64x32xf32>, vector<64x32xf32>, vector<64x32xf32> -> vector<64x160xf32>
      %19 = arith.index_cast %9 : i32 to index
      %c0_12 = arith.constant 0 : index
      %c0_13 = arith.constant 0 : index
      %20 = vector.load %arg6[%19, %c0_12, %c0_13] : memref<2x160x32xf32, #tpu.memory_space<vmem>>, vector<1x160x32xf32>
      %21 = vector.shape_cast %20 : vector<1x160x32xf32> to vector<160x32xf32>
      %22 = arith.index_cast %9 : i32 to index
      %c0_14 = arith.constant 0 : index
      %c0_15 = arith.constant 0 : index
      %23 = vector.load %arg7[%22, %c0_14, %c0_15] : memref<2x1x32xf32, #tpu.memory_space<vmem>>, vector<1x1x32xf32>
      %24 = vector.shape_cast %23 : vector<1x1x32xf32> to vector<1x32xf32>
      %cst_16 = arith.constant dense<0.000000e+00> : vector<64x32xf32>
      %25 = tpu.matmul %18, %21, %cst_16 {dimension_numbers = #tpu.dot_dimension_numbers<[1], [0], [0], [1], [0, 0, 1, 1], [], []>} : vector<64x160xf32>, vector<160x32xf32>, vector<64x32xf32> -> vector<64x32xf32>
      %26 = vector.broadcast %24 : vector<1x32xf32> to vector<64x32xf32>
      %27 = arith.addf %25, %26 : vector<64x32xf32>
      %28 = math.tanh %27 : vector<64x32xf32>
      %29 = vector.extract_strided_slice %28 {offsets = [0, 0], sizes = [64, 8], strides = [1, 1]} : vector<64x32xf32> to vector<64x8xf32>
      %30 = vector.extract_strided_slice %28 {offsets = [0, 8], sizes = [64, 8], strides = [1, 1]} : vector<64x32xf32> to vector<64x8xf32>
      %31 = vector.extract_strided_slice %28 {offsets = [0, 16], sizes = [64, 8], strides = [1, 1]} : vector<64x32xf32> to vector<64x8xf32>
      %32 = vector.extract_strided_slice %28 {offsets = [0, 24], sizes = [64, 8], strides = [1, 1]} : vector<64x32xf32> to vector<64x8xf32>
      %33 = arith.mulf %29, %29 : vector<64x8xf32>
      %34 = arith.mulf %30, %30 : vector<64x8xf32>
      %35 = arith.addf %33, %34 : vector<64x8xf32>
      %36 = arith.mulf %31, %31 : vector<64x8xf32>
      %37 = arith.addf %35, %36 : vector<64x8xf32>
      %38 = arith.mulf %32, %32 : vector<64x8xf32>
      %39 = arith.addf %37, %38 : vector<64x8xf32>
      %40 = math.sqrt %39 : vector<64x8xf32>
      %cst_17 = arith.constant 9.99999996E-13 : f32
      %41 = vector.broadcast %cst_17 : f32 to vector<64x8xf32>
      %42 = arith.maximumf %40, %41 : vector<64x8xf32>
      %43 = tpu.reciprocal %42 {approx = true} : vector<64x8xf32> -> vector<64x8xf32>
      %44 = arith.mulf %29, %43 : vector<64x8xf32>
      %45 = arith.mulf %30, %43 : vector<64x8xf32>
      %46 = arith.mulf %31, %43 : vector<64x8xf32>
      %47 = arith.mulf %32, %43 : vector<64x8xf32>
      %48 = tpu.concatenate %44, %45, %46, %47 in 1 : vector<64x8xf32>, vector<64x8xf32>, vector<64x8xf32>, vector<64x8xf32> -> vector<64x32xf32>
      %c0_18 = arith.constant 0 : index
      %c0_19 = arith.constant 0 : index
      %49 = vector.load %arg9[%c0_18, %c0_19] : memref<64x32xf32, #tpu.memory_space<vmem>>, vector<64x32xf32>
      tpu.vector_store %arg9[%c0_18, %c0_19], %48 {strides = array<i32>} : memref<64x32xf32, #tpu.memory_space<vmem>>, vector<64x32xf32>,
    } else {
    }
    %c2_i32 = arith.constant 2 : i32
    %6 = arith.cmpi eq, %arg0, %c2_i32 : i32
    %7 = arith.extui %6 : i1 to i32
    %c0_i32_3 = arith.constant 0 : i32
    %8 = arith.cmpi ne, %7, %c0_i32_3 : i32
    scf.if %8 {
      %c0 = arith.constant 0 : index
      %c0_4 = arith.constant 0 : index
      %9 = vector.load %arg9[%c0, %c0_4] : memref<64x32xf32, #tpu.memory_space<vmem>>, vector<64x32xf32>
      %c0_5 = arith.constant 0 : index
      %c0_6 = arith.constant 0 : index
      %10 = vector.load %arg8[%c0_5, %c0_6] : memref<64x32xf32, #tpu.memory_space<vmem>>, vector<64x32xf32>
      tpu.vector_store %arg8[%c0_5, %c0_6], %9 {strides = array<i32>} : memref<64x32xf32, #tpu.memory_space<vmem>>, vector<64x32xf32>,
    } else {
    }
    return
  }
  func.func @transform_0(%arg0: i32) -> (i32, i32) {
    %c0_i32 = arith.constant 0 : i32
    %c0_i32_0 = arith.constant 0 : i32
    %c0_i32_1 = arith.constant 0 : i32
    return %c0_i32, %c0_i32_0 : i32, i32
  }
  func.func @transform_1(%arg0: i32) -> (i32, i32) {
    %c0_i32 = arith.constant 0 : i32
    %c0_i32_0 = arith.constant 0 : i32
    %c0_i32_1 = arith.constant 0 : i32
    return %c0_i32, %c0_i32_0 : i32, i32
  }
  func.func @transform_2(%arg0: i32) -> (i32, i32) {
    %c0_i32 = arith.constant 0 : i32
    %c0_i32_0 = arith.constant 0 : i32
    %c0_i32_1 = arith.constant 0 : i32
    return %c0_i32, %c0_i32_0 : i32, i32
  }
  func.func @transform_3(%arg0: i32) -> (i32, i32) {
    %c0_i32 = arith.constant 0 : i32
    %c0_i32_0 = arith.constant 0 : i32
    %c0_i32_1 = arith.constant 0 : i32
    return %c0_i32, %c0_i32_0 : i32, i32
  }
  func.func @transform_4(%arg0: i32) -> (i32, i32) {
    %c0_i32 = arith.constant 0 : i32
    %c0_i32_0 = arith.constant 0 : i32
    %c0_i32_1 = arith.constant 0 : i32
    return %c0_i32, %c0_i32_0 : i32, i32
  }
  func.func @transform_5(%arg0: i32) -> (i32, i32, i32) {
    %c0_i32 = arith.constant 0 : i32
    %c0_i32_0 = arith.constant 0 : i32
    %c0_i32_1 = arith.constant 0 : i32
    %c0_i32_2 = arith.constant 0 : i32
    return %c0_i32, %c0_i32_0, %c0_i32_1 : i32, i32, i32
  }
  func.func @transform_6(%arg0: i32) -> (i32, i32, i32) {
    %c0_i32 = arith.constant 0 : i32
    %c0_i32_0 = arith.constant 0 : i32
    %c0_i32_1 = arith.constant 0 : i32
    %c0_i32_2 = arith.constant 0 : i32
    return %c0_i32, %c0_i32_0, %c0_i32_1 : i32, i32, i32
  }
  func.func @transform_7(%arg0: i32) -> (i32, i32) {
    %c0_i32 = arith.constant 0 : i32
    %c0_i32_0 = arith.constant 0 : i32
    %c0_i32_1 = arith.constant 0 : i32
    return %c0_i32, %c0_i32_0 : i32, i32
  }
}

</mosaic_0001>

<bundles_post_ra>
// kernel: tpu_custom_call.1
= control target key start
LH: loop header
LB: loop body
LE: loop exit
PB: predicated region body
PF: predicated region fallthrough
CT: control target
= control target key end

     0   :  { %s2244_s24 = smov 0   ;;  %s2933_s0 = inlined_call_operand.vmem [shape: f32[64,32], index: 0, kind: input, shape index: {}]   ;;  %s2934_s1 = inlined_call_operand.vmem [shape: f32[32,32], index: 1, kind: input, shape index: {}]   ;;  %s2935_s2 = inlined_call_operand.vmem [shape: f32[1,32], index: 2, kind: input, shape index: {}]   ;;  %s2936_s3 = inlined_call_operand.vmem [shape: bf16[64,64], index: 3, kind: input, shape index: {}]   ;;  %s2937_s4 = inlined_call_operand.vmem [shape: bf16[64,64], index: 4, kind: input, shape index: {}]   ;;  %s2938_s5 = inlined_call_operand.vmem [shape: f32[2,160,32], index: 5, kind: input, shape index: {}]   ;;  %s2939_s6 = inlined_call_operand.vmem [shape: f32[2,1,32], index: 6, kind: input, shape index: {}]   ;;  %s2940_s7 = inlined_call_operand.vmem [shape: f32[64,32], index: 7, kind: output, shape index: {}]  }
   0x1 LB: > { %s2250_s25 = sadd.s32 4294967295, %s2186_s24   ;;  %p1821_p0 = scmp.ge.s32.totalorder %s2186_s24, 1  ;;  %s2186_s24 = sphi %s2244_s24, %s17_s24  }
   0x2   : > { %p222_p1 = scmp.lt.s32.totalorder %s2186_s24, 4 }
   0x4   : > { %p223_p2 = pnand %p1821_p0, %p222_p1 }
   0x5   : > { %p1822_p3 = scmp.ne.s32.totalorder (!%p223_p2), %s2250_s25, 0 }
   0x6   : > { %226 = sbr.rel (%p223_p2) target bundleno = 1567 (0x61f), region = 48 }
   0xb   : > { %248 = sbr.rel (%p1822_p3) target bundleno = 572 (0x23c), region = 52  ;;  %s2188_s8 = smov (!%p1822_p3), 120  }
   0xc   : > { %s2189_s9 = smov (!%p1822_p3), 112   ;;  %s2190_s10 = smov (!%p1822_p3), 104  }
   0xd   : > { %s2191_s11 = smov (!%p1822_p3), 8   ;;  %s2192_s12 = smov (!%p1822_p3), 16  }
   0xe   : > { %s2193_s13 = smov (!%p1822_p3), 24  }
  0x10   : > { %v260_v0 = vld [vmem:[%s2934_s1 + $0x18] sm:$0xff]  ;;  %v259_v1 = vld [vmem:[%s2934_s1 + $0x10] sm:$0xff]  ;;  %v258_v2 = vld [vmem:[%s2934_s1 + $0x8] sm:$0xff]  ;;  %vm268_vm0 = vcmask 261120  }
  0x11   : > { %1914 = vmatprep.subr.mxu0 %v260_v0  ;;  %1998 = vmatprep.subr.mxu1 %v260_v0  ;;  %v257_v3 = vld [vmem:[%s2934_s1] sm:$0xff]  ;;  %v250_v6 = vld [vmem:[%s2933_s0 + $0x8] sm:$0xff]  ;;  %v251_v8 = vld [vmem:[%s2933_s0 + $0x10] sm:$0xff] }
  0x12   : > { %1915 = vmatpush3.msra.mxu0 %v260_v0  ;;  %2002 = vmatpush3.msra.mxu1 %v260_v0  ;;  %v249_v4 = vld [vmem:[%s2933_s0] sm:$0xff]  ;;  %v254_v7 = vld [vmem:[%s2933_s0 + $0x28] sm:$0xff]  ;;  %v255_v9 = vld [vmem:[%s2933_s0 + $0x30] sm:$0xff] }
  0x13   : > { %1916 = vmatprep.subr.mxu0 %v259_v1  ;;  %1999 = vmatprep.subr.mxu1 %v259_v1  ;;  %v253_v5 = vld [vmem:[%s2933_s0 + $0x20] sm:$0xff]  ;;  %v252_v10 = vld [vmem:[%s2933_s0 + $0x18] sm:$0xff] }
  0x14   : > { %1917 = vmatpush3.msra.mxu0 %v259_v1  ;;  %2003 = vmatpush3.msra.mxu1 %v259_v1  ;;  %v256_v11 = vld [vmem:[%s2933_s0 + $0x38] sm:$0xff]  ;;  %v1823_v12 = vld [vmem:[%s2935_s2] ss:$0 sm:$0xff] }
  0x15   : > { %1918 = vmatprep.subr.mxu0 %v258_v2  ;;  %2000 = vmatprep.subr.mxu1 %v258_v2 }
  0x16   : > { %1919 = vmatpush3.msra.mxu0 %v258_v2  ;;  %2004 = vmatpush3.msra.mxu1 %v258_v2 }
  0x17   : > { %1920 = vmatprep.subr.mxu0 %v257_v3  ;;  %2001 = vmatprep.subr.mxu1 %v257_v3 }
  0x18   : > { %1921 = vmatpush3.msra.mxu0 %v257_v3  ;;  %2005 = vmatpush3.msra.mxu1 %v257_v3 }
  0x19   : > { %1922 = vmatprep.mubr.msk.f32.mxu0 %vm268_vm0, %v249_v4  ;;  %1928 = vmatprep.mubr.msk.f32.mxu1 %vm268_vm0, %v253_v5 }
  0x1a   : > { %1923 = vmatmul.mubr.msk.f32.vlgmr.msra.gmra.mxu0 %vm268_vm0, %v250_v6  ;;  %1929 = vmatmul.mubr.msk.f32.vlgmr.msra.gmra.mxu1 %vm268_vm0, %v254_v7 }
  0x1b   : > { %1925 = vmatprep.mubr.msk.f32.mxu0 %vm268_vm0, %v251_v8  ;;  %1931 = vmatprep.mubr.msk.f32.mxu1 %vm268_vm0, %v255_v9 }
  0x1e   : > { %1926 = vmatmul.mubr.msk.f32.gmra.mxu0 %vm268_vm0, %v252_v10  ;;  %1932 = vmatmul.mubr.msk.f32.gmra.mxu1 %vm268_vm0, %v256_v11 }
  0xda   : > { %v1924_v13 = vpop.f32.mrf.mxu0  ;;  %v1930_v14 = vpop.f32.mrf.mxu1 }
  0xdb   : > { %v365_v15 = vadd.f32 %v1924_v13, %v1823_v12  ;;  %v385_v16 = vadd.f32 %v1930_v14, %v1823_v12 }
  0xdc   : > { %v359_v17 = vpop.f32.mrf.mxu0  ;;  %v379_v18 = vpop.f32.mrf.mxu1 }
  0xdd   : > { %2031 = vtanh.f32 %v365_v15  ;;  %v360_v19 = vadd.f32 %v1823_v12, %v359_v17  ;;  %v380_v20 = vadd.f32 %v1823_v12, %v379_v18 }
  0xde   : > { %2033 = vtanh.f32 %v385_v16  ;;  %v1927_v21 = vpop.f32.mrf.mxu0  ;;  %v1933_v28 = vpop.f32.mrf.mxu1 }
  0xdf   : > { %2035 = vtanh.f32 %v360_v19  ;;  %v375_v23 = vadd.f32 %v1927_v21, %v1823_v12  ;;  %v395_v29 = vadd.f32 %v1933_v28, %v1823_v12 }
  0xe0   : > { %2037 = vtanh.f32 %v380_v20  ;;  %v389_v32 = vpop.f32.mrf.mxu1  ;;  %v369_v35 = vpop.f32.mrf.mxu0 }
  0xe1   : > { %2039 = vtanh.f32 %v375_v23  ;;  %v390_v33 = vadd.f32 %v1823_v12, %v389_v32  ;;  %v370_v36 = vadd.f32 %v1823_v12, %v369_v35 }
  0xe2   : > { %2041 = vtanh.f32 %v395_v29 }
  0xe3   : > { %2043 = vtanh.f32 %v390_v33 }
  0xe4   : > { %2045 = vtanh.f32 %v370_v36 }
  0xea   : > { %v2302_v22 = vpop.eup %2031 }
  0xeb   : > { %v2304_v24 = vpop.eup %2033  ;;  %v407_v25 = vmul.f32 %v2302_v22, %v2302_v22 }
  0xec   : > { %v2308_v26 = vpop.eup %2035  ;;  %v411_v27 = vmul.f32 %v2304_v24, %v2304_v24 }
  0xed   : > { %424 = vrot.lane.b32.xlu0 %v407_v25, %s2188_s8  ;;  %v406_v30 = vmul.f32 %v2308_v26, %v2308_v26  ;;  %v2316_v31 = vpop.eup %2037 }
  0xee   : > { %432 = vrot.lane.b32.xlu1 %v411_v27, %s2188_s8  ;;  %v410_v34 = vmul.f32 %v2316_v31, %v2316_v31  ;;  %v2325_v37 = vpop.eup %2039 }
  0xef   : > { %v2330_v38 = vmul.f32 %v2325_v37, %v2325_v37  ;;  %v2332_v39 = vpop.eup %2041 }
  0xf0   : > { %v2338_v40 = vmul.f32 %v2332_v39, %v2332_v39  ;;  %v2340_v41 = vpop.eup %2043 }
  0xf1   : > { %422 = vrot.lane.b32.xlu0 %v406_v30, %s2188_s8  ;;  %v2346_v42 = vmul.f32 %v2340_v41, %v2340_v41  ;;  %v2348_v43 = vpop.eup %2045 }
  0xf2   : > { %456 = vrot.lane.b32.xlu1 %v407_v25, %s2189_s9  ;;  %v2356_v44 = vmul.f32 %v2348_v43, %v2348_v43 }
  0xf5   : > { %430 = vrot.lane.b32.xlu0 %v410_v34, %s2188_s8 }
  0xf6   : > { %464 = vrot.lane.b32.xlu1 %v411_v27, %s2189_s9 }
  0xf9   : > { %454 = vrot.lane.b32.xlu0 %v406_v30, %s2189_s9 }
  0xfa   : > { %488 = vrot.lane.b32.xlu1 %v407_v25, %s2190_s10 }
  0xfd   : > { %462 = vrot.lane.b32.xlu0 %v410_v34, %s2189_s9 }
  0xfe   : > { %496 = vrot.lane.b32.xlu1 %v411_v27, %s2190_s10 }
 0x101   : > { %486 = vrot.lane.b32.xlu0 %v406_v30, %s2190_s10 }
 0x102   : > { %428 = vrot.lane.b32.xlu1 %v2330_v38, %s2188_s8 }
 0x105   : > { %494 = vrot.lane.b32.xlu0 %v410_v34, %s2190_s10 }
 0x106   : > { %436 = vrot.lane.b32.xlu1 %v2338_v40, %s2188_s8 }
 0x109   : > { %434 = vrot.lane.b32.xlu0 %v2346_v42, %s2188_s8 }
 0x10a   : > { %460 = vrot.lane.b32.xlu1 %v2330_v38, %s2189_s9 }
 0x10d   : > { %458 = vrot.lane.b32.xlu0 %v2356_v44, %s2189_s9 }
 0x10e   : > { %468 = vrot.lane.b32.xlu1 %v2338_v40, %s2189_s9 }
 0x111   : > { %466 = vrot.lane.b32.xlu0 %v2346_v42, %s2189_s9 }
 0x112   : > { %492 = vrot.lane.b32.xlu1 %v2330_v38, %s2190_s10 }
 0x115   : > { %490 = vrot.lane.b32.xlu0 %v2356_v44, %s2190_s10 }
 0x116   : > { %426 = vrot.lane.b32.xlu1 %v2356_v44, %s2188_s8 }
 0x119   : > { %498 = vrot.lane.b32.xlu0 %v2346_v42, %s2190_s10 }
 0x11a   : > { %500 = vrot.lane.b32.xlu1 %v2338_v40, %s2190_s10 }
 0x15f   : > { %v425_v45 = vpop.permute.xlu0 %424 }
 0x160   : > { %v433_v46 = vpop.permute.xlu1 %432  ;;  %v447_v51 = vadd.f32 %v425_v45, %v407_v25 }
 0x161   : > { %v451_v55 = vadd.f32 %v433_v46, %v411_v27 }
 0x163   : > { %v423_v47 = vpop.permute.xlu0 %422 }
 0x164   : > { %v457_v48 = vpop.permute.xlu1 %456  ;;  %v446_v59 = vadd.f32 %v423_v47, %v406_v30 }
 0x165   : > { %v479_v52 = vadd.f32 %v457_v48, %v447_v51 }
 0x167   : > { %v431_v49 = vpop.permute.xlu0 %430 }
 0x168   : > { %v465_v50 = vpop.permute.xlu1 %464  ;;  %v450_v0 = vadd.f32 %v431_v49, %v410_v34 }
 0x169   : > { %v483_v57 = vadd.f32 %v465_v50, %v451_v55 }
 0x16b   : > { %v455_v53 = vpop.permute.xlu0 %454 }
 0x16c   : > { %v489_v54 = vpop.permute.xlu1 %488  ;;  %v478_v62 = vadd.f32 %v455_v53, %v446_v59 }
 0x16d   : > { %v511_v56 = vadd.f32 %v489_v54, %v479_v52 }
 0x16f   : > { %2047 = vrsqrt.f32 %v511_v56  ;;  %v463_v58 = vpop.permute.xlu0 %462  ;;  %vm527_vm1 = vcmp.eq.f32.partialorder %v511_v56, inf  ;;  %v530_v11 = vand.u32 2147483648, %v511_v56  ;;  %vm529_vm2 = vcmp.eq.f32.partialorder %v511_v56, 0.0 }
 0x170   : > { %v497_v60 = vpop.permute.xlu1 %496  ;;  %v482_v3 = vadd.f32 %v463_v58, %v450_v0 }
 0x171   : > { %v515_v61 = vadd.f32 %v497_v60, %v483_v57 }
 0x173   : > { %2049 = vrsqrt.f32 %v515_v61  ;;  %v487_v63 = vpop.permute.xlu0 %486  ;;  %vm555_vm3 = vcmp.eq.f32.partialorder %v515_v61, inf  ;;  %v558_v20 = vand.u32 2147483648, %v515_v61  ;;  %vm557_vm4 = vcmp.eq.f32.partialorder %v515_v61, 0.0 }
 0x174   : > { %v429_v1 = vpop.permute.xlu1 %428  ;;  %v510_v2 = vadd.f32 %v487_v63, %v478_v62 }
 0x175   : > { %v449_v19 = vadd.f32 %v429_v1, %v2330_v38 }
 0x176   : > { %2051 = vrsqrt.f32 %v510_v2  ;;  %vm520_vm5 = vcmp.eq.f32.partialorder %v510_v2, inf  ;;  %v523_v33 = vand.u32 2147483648, %v510_v2  ;;  %vm522_vm6 = vcmp.eq.f32.partialorder %v510_v2, 0.0 }
 0x177   : > { %v495_v4 = vpop.permute.xlu0 %494 }
 0x178   : > { %v437_v5 = vpop.permute.xlu1 %436  ;;  %v514_v6 = vadd.f32 %v495_v4, %v482_v3 }
 0x179   : > { %v453_v47 = vadd.f32 %v437_v5, %v2338_v40 }
 0x17a   : > { %2053 = vrsqrt.f32 %v514_v6  ;;  %vm548_vm7 = vcmp.eq.f32.partialorder %v514_v6, inf  ;;  %v551_v50 = vand.u32 2147483648, %v514_v6  ;;  %vm550_vm8 = vcmp.eq.f32.partialorder %v514_v6, 0.0 }
 0x17b   : > { %v435_v7 = vpop.permute.xlu0 %434 }
 0x17c   : > { %v2048_v8 = vpop.eup %2047  ;;  %v461_v9 = vpop.permute.xlu1 %460  ;;  %v452_v51 = vadd.f32 %v435_v7, %v2346_v42 }
 0x17d   : > { %v526_v10 = vmul.f32 %v2048_v8, %v511_v56  ;;  %v481_v25 = vadd.f32 %v461_v9, %v449_v19 }
 0x17f   : > { %v528_v12 = vsel %vm527_vm1, %v511_v56, %v526_v10  ;;  %v459_v13 = vpop.permute.xlu0 %458 }
 0x180   : > { %v2050_v14 = vpop.eup %2049  ;;  %v531_v15 = vsel %vm529_vm2, %v530_v11, %v528_v12  ;;  %v469_v16 = vpop.permute.xlu1 %468  ;;  %vm702_vm2 = vcmask 64512  }
 0x181   : > { %v575_v17 = vmax.f32 %v531_v15, 1e-12  ;;  %v554_v18 = vmul.f32 %v2050_v14, %v515_v61  ;;  %v485_v55 = vadd.f32 %v469_v16, %v453_v47 }
 0x183   : > { %v2052_v21 = vpop.eup %2051  ;;  %2055 = vrcp.f32 %v575_v17  ;;  %v556_v23 = vsel %vm555_vm3, %v515_v61, %v554_v18  ;;  %v467_v27 = vpop.permute.xlu0 %466  ;;  %vm711_vm3 = vcmask 130048  }
 0x184   : > { %v559_v28 = vsel %vm557_vm4, %v558_v20, %v556_v23  ;;  %v519_v29 = vmul.f32 %v2052_v21, %v510_v2  ;;  %v493_v30 = vpop.permute.xlu1 %492  ;;  %v484_v56 = vadd.f32 %v467_v27, %v452_v51  ;;  %vm720_vm4 = vcmask 195584  }
 0x185   : > { %v579_v32 = vmax.f32 %v559_v28, 1e-12  ;;  %v513_v34 = vadd.f32 %v493_v30, %v481_v25 }
 0x186   : > { %v521_v35 = vsel %vm520_vm5, %v510_v2, %v519_v29 }
 0x187   : > { %v2054_v36 = vpop.eup %2053  ;;  %2057 = vrcp.f32 %v579_v32  ;;  %v524_v38 = vsel %vm522_vm6, %v523_v33, %v521_v35  ;;  %v491_v45 = vpop.permute.xlu0 %490  ;;  %vm541_vm9 = vcmp.eq.f32.partialorder %v513_v34, inf  ;;  %v544_v2 = vand.u32 2147483648, %v513_v34 }
 0x188   : > { %v574_v46 = vmax.f32 %v524_v38, 1e-12  ;;  %v547_v48 = vmul.f32 %v2054_v36, %v514_v6  ;;  %2059 = vrsqrt.f32 %v513_v34  ;;  %v427_v49 = vpop.permute.xlu1 %426  ;;  %vm543_vm10 = vcmp.eq.f32.partialorder %v513_v34, 0.0 }
 0x189   : > { %v448_v52 = vadd.f32 %v427_v49, %v2356_v44 }
 0x18a   : > { %2061 = vrcp.f32 %v574_v46  ;;  %v549_v53 = vsel %vm548_vm7, %v514_v6, %v547_v48 }
 0x18b   : > { %v552_v54 = vsel %vm550_vm8, %v551_v50, %v549_v53  ;;  %v480_v57 = vadd.f32 %v459_v13, %v448_v52  ;;  %v499_v58 = vpop.permute.xlu0 %498 }
 0x18c   : > { %v578_v59 = vmax.f32 %v552_v54, 1e-12  ;;  %v501_v60 = vpop.permute.xlu1 %500  ;;  %v516_v62 = vadd.f32 %v499_v58, %v484_v56 }
 0x18d   : > { %v512_v40 = vadd.f32 %v491_v45, %v480_v57  ;;  %v517_v61 = vadd.f32 %v501_v60, %v485_v55 }
 0x18e   : > { %2063 = vrcp.f32 %v578_v59  ;;  %vm562_vm11 = vcmp.eq.f32.partialorder %v516_v62, inf  ;;  %v565_v18 = vand.u32 2147483648, %v516_v62  ;;  %vm564_vm1 = vcmp.eq.f32.partialorder %v516_v62, 0.0 }
 0x18f   : > { %2065 = vrsqrt.f32 %v512_v40  ;;  %vm534_vm12 = vcmp.eq.f32.partialorder %v512_v40, inf  ;;  %vm536_vm13 = vcmp.eq.f32.partialorder %v512_v40, 0.0  ;;  %v537_v11 = vand.u32 2147483648, %v512_v40 }
 0x190   : > { %v2374_v63 = vpop.eup %2055  ;;  %2067 = vrsqrt.f32 %v517_v61  ;;  %vm569_vm14 = vcmp.eq.f32.partialorder %v517_v61, inf  ;;  %v572_v14 = vand.u32 2147483648, %v517_v61  ;;  %vm571_vm15 = vcmp.eq.f32.partialorder %v517_v61, 0.0 }
 0x191   : > { %2069 = vrsqrt.f32 %v516_v62  ;;  %608 = vrot.lane.b32.xlu1 %v2374_v63, %s2191_s11  ;;  %v591_v48 = vmul.f32 %v2374_v63, %v2302_v22 }
 0x194   : > { %v2378_v42 = vpop.eup %2057 }
 0x195   : > { %v2060_v44 = vpop.eup %2059  ;;  %616 = vrot.lane.b32.xlu1 %v2378_v42, %s2191_s11  ;;  %v595_v56 = vmul.f32 %v2378_v42, %v2304_v24 }
 0x196   : > { %v540_v0 = vmul.f32 %v2060_v44, %v513_v34 }
 0x197   : > { %v2382_v1 = vpop.eup %2061 }
 0x198   : > { %v542_v3 = vsel %vm541_vm9, %v513_v34, %v540_v0  ;;  %606 = vrot.lane.b32.xlu0 %v2382_v1, %s2191_s11 }
 0x199   : > { %v545_v4 = vsel %vm543_vm10, %v544_v2, %v542_v3  ;;  %640 = vrot.lane.b32.xlu1 %v2374_v63, %s2192_s12 }
 0x19a   : > { %v577_v5 = vmax.f32 %v545_v4, 1e-12 }
 0x19b   : > { %v2388_v6 = vpop.eup %2063 }
 0x19c   : > { %v2066_v7 = vpop.eup %2065  ;;  %2071 = vrcp.f32 %v577_v5  ;;  %614 = vrot.lane.b32.xlu0 %v2388_v6, %s2191_s11 }
 0x19d   : > { %v2068_v8 = vpop.eup %2067  ;;  %v533_v9 = vmul.f32 %v2066_v7, %v512_v40  ;;  %648 = vrot.lane.b32.xlu1 %v2378_v42, %s2192_s12 }
 0x19e   : > { %v2070_v10 = vpop.eup %2069  ;;  %v568_v12 = vmul.f32 %v2068_v8, %v517_v61 }
 0x19f   : > { %v535_v13 = vsel %vm534_vm12, %v512_v40, %v533_v9  ;;  %v561_v15 = vmul.f32 %v2070_v10, %v516_v62 }
 0x1a0   : > { %v538_v16 = vsel %vm536_vm13, %v537_v11, %v535_v13  ;;  %v570_v17 = vsel %vm569_vm14, %v517_v61, %v568_v12  ;;  %638 = vrot.lane.b32.xlu0 %v2382_v1, %s2192_s12 }
 0x1a1   : > { %v576_v19 = vmax.f32 %v538_v16, 1e-12  ;;  %v573_v20 = vsel %vm571_vm15, %v572_v14, %v570_v17  ;;  %v563_v21 = vsel %vm562_vm11, %v516_v62, %v561_v15  ;;  %672 = vrot.lane.b32.xlu1 %v2374_v63, %s2193_s13  ;;  %v590_v62 = vmul.f32 %v2382_v1, %v2308_v26 }
 0x1a2   : > { %v581_v23 = vmax.f32 %v573_v20, 1e-12  ;;  %v566_v25 = vsel %vm564_vm1, %v565_v18, %v563_v21 }
 0x1a3   : > { %2073 = vrcp.f32 %v576_v19  ;;  %v580_v27 = vmax.f32 %v566_v25, 1e-12 }
 0x1a4   : > { %2075 = vrcp.f32 %v581_v23  ;;  %646 = vrot.lane.b32.xlu0 %v2388_v6, %s2192_s12 }
 0x1a5   : > { %680 = vrot.lane.b32.xlu1 %v2378_v42, %s2193_s13  ;;  %2077 = vrcp.f32 %v580_v27 }
 0x1a8   : > { %670 = vrot.lane.b32.xlu0 %v2382_v1, %s2193_s13  ;;  %v594_v1 = vmul.f32 %v2388_v6, %v2316_v31 }
 0x1a9   : > { %v2402_v28 = vpop.eup %2071 }
 0x1aa   : > { %612 = vrot.lane.b32.xlu1 %v2402_v28, %s2191_s11 }
 0x1ac   : > { %678 = vrot.lane.b32.xlu0 %v2388_v6, %s2193_s13 }
 0x1b0   : > { %v2407_v29 = vpop.eup %2073 }
 0x1b1   : > { %v2409_v30 = vpop.eup %2075  ;;  %610 = vrot.lane.b32.xlu0 %v2407_v29, %s2191_s11 }
 0x1b2   : > { %620 = vrot.lane.b32.xlu1 %v2409_v30, %s2191_s11  ;;  %v2415_v32 = vpop.eup %2077 }
 0x1b5   : > { %618 = vrot.lane.b32.xlu0 %v2415_v32, %s2191_s11 }
 0x1b6   : > { %644 = vrot.lane.b32.xlu1 %v2402_v28, %s2192_s12 }
 0x1b9   : > { %642 = vrot.lane.b32.xlu0 %v2407_v29, %s2192_s12 }
 0x1ba   : > { %652 = vrot.lane.b32.xlu1 %v2409_v30, %s2192_s12 }
 0x1bd   : > { %650 = vrot.lane.b32.xlu0 %v2415_v32, %s2192_s12 }
 0x1be   : > { %676 = vrot.lane.b32.xlu1 %v2402_v28, %s2193_s13 }
 0x1c1   : > { %674 = vrot.lane.b32.xlu0 %v2407_v29, %s2193_s13 }
 0x1c2   : > { %684 = vrot.lane.b32.xlu1 %v2409_v30, %s2193_s13 }
 0x1c5   : > { %682 = vrot.lane.b32.xlu0 %v2415_v32, %s2193_s13 }
 0x203   : > { %v609_v33 = vpop.permute.xlu1 %608 }
 0x204   : > { %v631_v46 = vmul.f32 %v2302_v22, %v609_v33 }
 0x206   : > { %v704_v51 = vsel %vm702_vm2, %v591_v48, %v631_v46 }
 0x207   : > { %v617_v34 = vpop.permute.xlu1 %616 }
 0x208   : > { %v635_v52 = vmul.f32 %v2304_v24, %v617_v34  ;;  %v592_v34 = vmul.f32 %v2407_v29, %v2348_v43 }
 0x20a   : > { %v607_v35 = vpop.permute.xlu0 %606  ;;  %v708_v40 = vsel %vm702_vm2, %v595_v56, %v635_v52 }
 0x20b   : > { %v641_v36 = vpop.permute.xlu1 %640  ;;  %v630_v59 = vmul.f32 %v2308_v26, %v607_v35 }
 0x20c   : > { %v663_v47 = vmul.f32 %v2302_v22, %v641_v36 }
 0x20d   : > { %v703_v0 = vsel %vm702_vm2, %v590_v62, %v630_v59 }
 0x20e   : > { %v615_v38 = vpop.permute.xlu0 %614  ;;  %v713_v54 = vsel %vm711_vm3, %v704_v51, %v663_v47  ;;  %v596_v51 = vmul.f32 %v2415_v32, %v2340_v41 }
 0x20f   : > { %v649_v45 = vpop.permute.xlu1 %648  ;;  %v634_v2 = vmul.f32 %v2316_v31, %v615_v38 }
 0x210   : > { %v667_v55 = vmul.f32 %v2304_v24, %v649_v45 }
 0x211   : > { %v707_v8 = vsel %vm702_vm2, %v594_v1, %v634_v2 }
 0x212   : > { %v639_v49 = vpop.permute.xlu0 %638  ;;  %v717_v63 = vsel %vm711_vm3, %v708_v40, %v667_v55 }
 0x213   : > { %v673_v50 = vpop.permute.xlu1 %672  ;;  %v662_v61 = vmul.f32 %v2308_v26, %v639_v49 }
 0x214   : > { %v695_v53 = vmul.f32 %v2302_v22, %v673_v50 }
 0x215   : > { %v712_v4 = vsel %vm711_vm3, %v703_v0, %v662_v61 }
 0x216   : > { %v722_v57 = vsel %vm720_vm4, %v713_v54, %v695_v53  ;;  %v647_v58 = vpop.permute.xlu0 %646 }
 0x217   : > { %730 = vst.msk [vmem:[#allocation2 + $0x8] sm:$0xff] %vm268_vm0, %v722_v57  ;;  %v681_v60 = vpop.permute.xlu1 %680 }
 0x218   : > { %v699_v22 = vmul.f32 %v2304_v24, %v681_v60  ;;  %v666_v24 = vmul.f32 %v2316_v31, %v647_v58 }
 0x21a   : > { %v726_v42 = vsel %vm720_vm4, %v717_v63, %v699_v22  ;;  %v671_v44 = vpop.permute.xlu0 %670  ;;  %v716_v10 = vsel %vm711_vm3, %v707_v8, %v666_v24 }
 0x21b   : > { %734 = vst.msk [vmem:[#allocation2 + $0x28] sm:$0xff] %vm268_vm0, %v726_v42  ;;  %v694_v3 = vmul.f32 %v2308_v26, %v671_v44 }
 0x21c   : > { %v613_v11 = vpop.permute.xlu1 %612 }
 0x21d   : > { %v721_v5 = vsel %vm720_vm4, %v712_v4, %v694_v3  ;;  %v633_v17 = vmul.f32 %v2325_v37, %v613_v11 }
 0x21e   : > { %729 = vst.msk [vmem:[#allocation2] sm:$0xff] %vm268_vm0, %v721_v5  ;;  %v679_v7 = vpop.permute.xlu0 %678 }
 0x21f   : > { %v698_v9 = vmul.f32 %v2316_v31, %v679_v7  ;;  %v593_v31 = vmul.f32 %v2402_v28, %v2325_v37  ;;  %v597_v28 = vmul.f32 %v2409_v30, %v2332_v39 }
 0x221   : > { %v725_v26 = vsel %vm720_vm4, %v716_v10, %v698_v9  ;;  %v706_v23 = vsel %vm702_vm2, %v593_v31, %v633_v17 }
 0x222   : > { %733 = vst.msk [vmem:[#allocation2 + $0x20] sm:$0xff] %vm268_vm0, %v725_v26 }
 0x223   : > { %v611_v12 = vpop.permute.xlu0 %610 }
 0x224   : > { %v621_v13 = vpop.permute.xlu1 %620  ;;  %v632_v20 = vmul.f32 %v2348_v43, %v611_v12 }
 0x225   : > { %v637_v25 = vmul.f32 %v2332_v39, %v621_v13 }
 0x226   : > { %v705_v46 = vsel %vm702_vm2, %v592_v34, %v632_v20 }
 0x227   : > { %v619_v14 = vpop.permute.xlu0 %618  ;;  %v710_v29 = vsel %vm702_vm2, %v597_v28, %v637_v25 }
 0x228   : > { %v645_v6 = vpop.permute.xlu1 %644  ;;  %v636_v47 = vmul.f32 %v2340_v41, %v619_v14 }
 0x229   : > { %v665_v18 = vmul.f32 %v2325_v37, %v645_v6 }
 0x22a   : > { %v709_v55 = vsel %vm702_vm2, %v596_v51, %v636_v47 }
 0x22b   : > { %v643_v15 = vpop.permute.xlu0 %642  ;;  %v715_v35 = vsel %vm711_vm3, %v706_v23, %v665_v18 }
 0x22c   : > { %v653_v16 = vpop.permute.xlu1 %652  ;;  %v664_v27 = vmul.f32 %v2348_v43, %v643_v15 }
 0x22d   : > { %v669_v36 = vmul.f32 %v2332_v39, %v653_v16 }
 0x22e   : > { %v714_v49 = vsel %vm711_vm3, %v705_v46, %v664_v27 }
 0x22f   : > { %v651_v19 = vpop.permute.xlu0 %650  ;;  %v719_v52 = vsel %vm711_vm3, %v710_v29, %v669_v36 }
 0x230   : > { %v677_v21 = vpop.permute.xlu1 %676  ;;  %v668_v50 = vmul.f32 %v2340_v41, %v651_v19 }
 0x231   : > { %v697_v33 = vmul.f32 %v2325_v37, %v677_v21 }
 0x233   : > { %v724_v38 = vsel %vm720_vm4, %v715_v35, %v697_v33  ;;  %v675_v45 = vpop.permute.xlu0 %674 }
 0x234   : > { %732 = vst.msk [vmem:[#allocation2 + $0x18] sm:$0xff] %vm268_vm0, %v724_v38  ;;  %v685_v37 = vpop.permute.xlu1 %684  ;;  %v696_v48 = vmul.f32 %v2348_v43, %v675_v45 }
 0x235   : > { %v701_v30 = vmul.f32 %v2332_v39, %v685_v37  ;;  %v718_v39 = vsel %vm711_vm3, %v709_v55, %v668_v50 }
 0x236   : > { %v723_v53 = vsel %vm720_vm4, %v714_v49, %v696_v48 }
 0x237   : > { %v728_v54 = vsel %vm720_vm4, %v719_v52, %v701_v30  ;;  %731 = vst.msk [vmem:[#allocation2 + $0x10] sm:$0xff] %vm268_vm0, %v723_v53  ;;  %v683_v43 = vpop.permute.xlu0 %682 }
 0x238   : > { %736 = vst.msk [vmem:[#allocation2 + $0x38] sm:$0xff] %vm268_vm0, %v728_v54  ;;  %v700_v56 = vmul.f32 %v2340_v41, %v683_v43 }
 0x23a   : > { %v727_v57 = vsel %vm720_vm4, %v718_v39, %v700_v56 }
 0x23b   : > { %735 = vst.msk [vmem:[#allocation2 + $0x30] sm:$0xff] %vm268_vm0, %v727_v57 }
 0x23c PF: > { %p1832_p4 = scmp.le.s32.totalorder %s2250_s25, 0 }
 0x23d   : > { %s2194_s9 = smov (!%p1832_p4), 64   ;;  %s1833_s10 = sadd.s32 (!%p1832_p4), 4294967295, %s2250_s25 }
 0x23e   : > { %740 = sbr.rel (%p1832_p4) target bundleno = 1555 (0x613), region = 56  ;;  %s2196_s15 = smov (!%p1832_p4), 32  }
 0x23f   : > { %s1281_s11 = smul.u32 (!%p1832_p4), 160, %s1833_s10  ;;  %s2197_s16 = smov (!%p1832_p4), 96  }
 0x240   : > { %s1303_s19 = scalar_lea.vmem (!%p1832_p4), %s2939_s6, %s1833_s10  ;;  %s2198_s20 = smov (!%p1832_p4), 120  }
 0x241   : > { %s2578_s14 = scalar_lea.vmem (!%p1832_p4), %s2938_s5, %s1281_s11  ;;  %s2199_s21 = smov (!%p1832_p4), 112  }
 0x242   : > { %s2200_s22 = smov (!%p1832_p4), 104   ;;  %s2201_s23 = smov (!%p1832_p4), 8  }
 0x243   : > { %v2124_v32 = vld [vmem:[%s2936_s3] sm:$0xff]   ;;  %vm790_vm5 = vcmask 523264   ;;  %v2125_v41 = vld [vmem:[%s2936_s3 + $0x8] sm:$0xff]   ;;  %v2511_v58 = vld [vmem:[#allocation2 + $0x30] sm:$0xff]  ;;  %v2195_v15 = vmov 0.0   ;;  %vm1255_vm0 = vcmask 261120  }
 0x244   : > { %872 = vxpose.xlu0.c.b16.start [1/4] (short) (narrow) %v2124_v32, 64  ;;  %1942 = vmatprep.mubr.msk.bf16.mxu1 %vm790_vm5, %v2124_v32  ;;  %v2513_v59 = vld [vmem:[#allocation2 + $0x38] sm:$0xff]  ;;  %v2515_v60 = vld [vmem:[#allocation2 + $0x20] sm:$0xff]  ;;  %v2126_v40 = vld [vmem:[%s2936_s3 + $0x10] sm:$0xff]   ;;  %vm1272_vm6 = vcmask 785408   ;;  %s2202_s26 = smov 16  }
 0x245   : > { %v753_v61 = vpack.c.bf16 %v2513_v59, %v2511_v58  ;;  %v2522_v22 = vld [vmem:[#allocation2 + $0x28] sm:$0xff]  ;;  %v2526_v63 = vld [vmem:[#allocation2 + $0x10] sm:$0xff]  ;;  %v2528_v42 = vld [vmem:[#allocation2 + $0x18] sm:$0xff]  ;;  %1335 = vmatprep.subr.mxu0 %v2195_v15  ;;  %s2203_s27 = smov 24  }
 0x246   : > { %v752_v62 = vpack.c.bf16 %v2522_v22, %v2515_v60  ;;  %v2128_v44 = vld [vmem:[%s2937_s4] sm:$0xff]   ;;  %v2127_v0 = vld [vmem:[%s2936_s3 + $0x18] sm:$0xff]   ;;  %v751_v2 = vpack.c.bf16 %v2528_v42, %v2526_v63  ;;  %v2540_v4 = vld [vmem:[#allocation2 + $0x8] sm:$0xff]  ;;  %v2099_v39 = vpack.i.bf16 %v2528_v42, %v2526_v63 }
 0x247   : > { %1934 = vmatprep.subr.bf16.mxu1 %v753_v61  ;;  %1066 = vxpose.xlu1.c.b16.start [1/4] (short) (narrow) %v2128_v44, 64  ;;  %v2538_v3 = vld [vmem:[#allocation2] sm:$0xff]  ;;  %v2129_v24 = vld [vmem:[%s2937_s4 + $0x8] sm:$0xff]   ;;  %v2130_v5 = vld [vmem:[%s2937_s4 + $0x10] sm:$0xff]  }
 0x248   : > { %873 = vxpose.xlu0.c.b16.cont [2/4] (short) (narrow) %v2125_v41, 64  ;;  %1935 = vmatpush3.bf16.msra.mxu1 %v753_v61  ;;  %v750_v1 = vpack.c.bf16 %v2540_v4, %v2538_v3  ;;  %v2131_v7 = vld [vmem:[%s2937_s4 + $0x18] sm:$0xff]   ;;  %v2084_v6 = vpack.i.bf16 %v2540_v4, %v2538_v3  ;;  %v1297_v17 = vld [vmem:[%s2578_s14 + $0x70] sm:$0xff]  ;;  %v1296_v18 = vld [vmem:[%s2578_s14 + $0x68] sm:$0xff] }
 0x249   : > { %1936 = vmatprep.subr.bf16.mxu1 %v752_v62  ;;  %v1298_v16 = vld [vmem:[%s2578_s14 + $0x78] sm:$0xff]  ;;  %v1295_v31 = vld [vmem:[%s2578_s14 + $0x60] sm:$0xff]  ;;  %v1293_v20 = vld [vmem:[%s2578_s14 + $0x50] sm:$0xff] }
 0x24a   : > { %1336 = vmatpush1.msra.mxu0 %v1298_v16  ;;  %v1294_v19 = vld [vmem:[%s2578_s14 + $0x58] sm:$0xff]  ;;  %v1292_v21 = vld [vmem:[%s2578_s14 + $0x48] sm:$0xff]  ;;  %v1291_v23 = vld [vmem:[%s2578_s14 + $0x40] sm:$0xff] }
 0x24b   : > { %1067 = vxpose.xlu1.c.b16.cont [2/4] (short) (narrow) %v2129_v24, 64  ;;  %1337 = vmatprep.subr.mxu0 %v2195_v15  ;;  %v1290_v25 = vld [vmem:[%s2578_s14 + $0x38] sm:$0xff]  ;;  %v1289_v27 = vld [vmem:[%s2578_s14 + $0x30] sm:$0xff]  ;;  %v1288_v46 = vld [vmem:[%s2578_s14 + $0x28] sm:$0xff] }
 0x24c   : > { %874 = vxpose.xlu0.c.b16.cont [3/4] (short) (narrow) %v2126_v40, 64  ;;  %1937 = vmatpush3.bf16.msra.mxu1 %v752_v62  ;;  %v1287_v47 = vld [vmem:[%s2578_s14 + $0x20] sm:$0xff]  ;;  %v1286_v48 = vld [vmem:[%s2578_s14 + $0x18] sm:$0xff]  ;;  %v1285_v49 = vld [vmem:[%s2578_s14 + $0x10] sm:$0xff] }
 0x24d   : > { %1938 = vmatprep.subr.bf16.mxu1 %v751_v2  ;;  %1338 = vmatpush1.msra.mxu0 %v1297_v17  ;;  %v1284_v30 = vld [vmem:[%s2578_s14 + $0x8] sm:$0xff]  ;;  %v1283_v52 = vld [vmem:[%s2578_s14] sm:$0xff]  ;;  %v1302_v53 = vld [vmem:[%s2578_s14 + $0x98] sm:$0xff] }
 0x24e   : > { %1339 = vmatprep.subr.mxu0 %v2195_v15  ;;  %v1301_v55 = vld [vmem:[%s2578_s14 + $0x90] sm:$0xff]  ;;  %v1300_v32 = vld [vmem:[%s2578_s14 + $0x88] sm:$0xff] }
 0x24f   : > { %1068 = vxpose.xlu1.c.b16.cont [3/4] (short) (narrow) %v2130_v5, 64  ;;  %1340 = vmatpush1.msra.mxu0 %v1296_v18 }
 0x250   : > { %875 = vxpose.xlu0.c.b16.end [4/4] (short) (narrow) %v2127_v0, 64  ;;  %1939 = vmatpush3.bf16.msra.mxu1 %v751_v2 }
 0x251   : > { %1940 = vmatprep.subr.bf16.mxu1 %v750_v1  ;;  %1341 = vmatprep.subr.mxu0 %v2195_v15 }
 0x252   : > { %1342 = vmatpush1.msra.mxu0 %v1295_v31 }
 0x253   : > { %1069 = vxpose.xlu1.c.b16.end [4/4] (short) (narrow) %v2131_v7, 64  ;;  %1343 = vmatprep.subr.mxu0 %v2195_v15 }
 0x254   : > { %1941 = vmatpush3.bf16.msra.mxu1 %v750_v1  ;;  %1344 = vmatpush1.msra.mxu0 %v1294_v19 }
 0x255   : > { %1950 = vmatprep.subr.bf16.mxu1 %v753_v61  ;;  %1345 = vmatprep.subr.mxu0 %v2195_v15 }
 0x256   : > { %1346 = vmatpush1.msra.mxu0 %v1293_v20 }
 0x257   : > { %1943 = vmatmul.mubr.msk.bf16.vlgmr.msra.gmra.mxu1 %vm790_vm5, %v2125_v41  ;;  %2085 = vrot.lane.b32.xlu1 %v2084_v6, %s2194_s9 }
 0x258   : > { %1951 = vmatpush3.bf16.msra.mxu1 %v753_v61  ;;  %1946 = vmatprep.mubr.msk.bf16.mxu1 %vm790_vm5, %v2126_v40  ;;  %v1299_v40 = vld [vmem:[%s2578_s14 + $0x80] sm:$0xff] }
 0x259   : > { %1952 = vmatprep.subr.bf16.mxu1 %v752_v62  ;;  %1347 = vmatprep.subr.mxu0 %v2195_v15 }
 0x25a   : > { %1348 = vmatpush1.msra.mxu0 %v1292_v21 }
 0x25b   : > { %1349 = vmatprep.subr.mxu0 %v2195_v15 }
 0x25c   : > { %1953 = vmatpush3.bf16.msra.mxu1 %v752_v62  ;;  %1350 = vmatpush1.msra.mxu0 %v1291_v23 }
 0x25d   : > { %1954 = vmatprep.subr.bf16.mxu1 %v751_v2  ;;  %1351 = vmatprep.subr.mxu0 %v2195_v15 }
 0x25e   : > { %1352 = vmatpush1.msra.mxu0 %v1290_v25 }
 0x25f   : > { %1947 = vmatmul.mubr.msk.bf16.gmra.mxu1 %vm790_vm5, %v2127_v0  ;;  %1353 = vmatprep.subr.mxu0 %v2195_v15 }
 0x260   : > { %1955 = vmatpush3.bf16.msra.mxu1 %v751_v2  ;;  %1354 = vmatpush1.msra.mxu0 %v1289_v27 }
 0x261   : > { %1956 = vmatprep.subr.bf16.mxu1 %v750_v1  ;;  %1355 = vmatprep.subr.mxu0 %v2195_v15 }
 0x262   : > { %1356 = vmatpush1.msra.mxu0 %v1288_v46 }
 0x263   : > { %1357 = vmatprep.subr.mxu0 %v2195_v15 }
 0x264   : > { %1957 = vmatpush3.bf16.msra.mxu1 %v750_v1  ;;  %1358 = vmatpush1.msra.mxu0 %v1287_v47 }
 0x265   : > { %1966 = vmatprep.subr.bf16.mxu1 %v753_v61  ;;  %1359 = vmatprep.subr.mxu0 %v2195_v15 }
 0x266   : > { %1360 = vmatpush1.msra.mxu0 %v1286_v48 }
 0x267   : > { %1361 = vmatprep.subr.mxu0 %v2195_v15 }
 0x268   : > { %1362 = vmatpush1.msra.mxu0 %v1285_v49 }
 0x269   : > { %1363 = vmatprep.subr.mxu0 %v2195_v15 }
 0x26a   : > { %1364 = vmatpush1.msra.mxu0 %v1284_v30 }
 0x26b   : > { %1365 = vmatprep.subr.mxu0 %v2195_v15 }
 0x26c   : > { %1366 = vmatpush1.msra.mxu0 %v1283_v52 }
 0x26d   : > { %1391 = vmatprep.subr.mxu0 %v2195_v15 }
 0x26e   : > { %1392 = vmatpush2.msra.mxu0 %v1302_v53 }
 0x26f   : > { %1393 = vmatprep.subr.mxu0 %v2195_v15 }
 0x270   : > { %1394 = vmatpush2.msra.mxu0 %v1301_v55 }
 0x271   : > { %1395 = vmatprep.subr.mxu0 %v2195_v15 }
 0x272   : > { %1396 = vmatpush2.msra.mxu0 %v1300_v32 }
 0x273   : > { %1397 = vmatprep.subr.mxu0 %v2195_v15 }
 0x274   : > { %1398 = vmatpush2.msra.mxu0 %v1299_v40 }
 0x2a6   : > { %v880_v8 = vpop.trf.xlu0 }
 0x2a7   : > { %1958 = vmatprep.mubr.msk.bf16.mxu1 %vm790_vm5, %v880_v8 }
 0x2a9   : > { %v1074_v26 = vpop.trf.xlu1 }
 0x2aa   : > { %v881_v9 = vpop.trf.xlu0 }
 0x2ab   : > { %1959 = vmatmul.mubr.msk.bf16.vlgmr.msra.gmra.mxu1 %vm790_vm5, %v881_v9 }
 0x2ac   : > { %1967 = vmatpush3.bf16.msra.mxu1 %v753_v61 }
 0x2ad   : > { %1968 = vmatprep.subr.bf16.mxu1 %v752_v62  ;;  %v1075_v12 = vpop.trf.xlu1 }
 0x2ae   : > { %v882_v10 = vpop.trf.xlu0 }
 0x2af   : > { %1962 = vmatprep.mubr.msk.bf16.mxu1 %vm790_vm5, %v882_v10  ;;  %v2114_v10 = vpack.i.bf16 %v2522_v22, %v2515_v60 }
 0x2b0   : > { %1969 = vmatpush3.bf16.msra.mxu1 %v752_v62 }
 0x2b1   : > { %1970 = vmatprep.subr.bf16.mxu1 %v751_v2  ;;  %v1076_v13 = vpop.trf.xlu1 }
 0x2b2   : > { %v883_v11 = vpop.trf.xlu0 }
 0x2b3   : > { %1963 = vmatmul.mubr.msk.bf16.gmra.mxu1 %vm790_vm5, %v883_v11 }
 0x2b4   : > { %1971 = vmatpush3.bf16.msra.mxu1 %v751_v2  ;;  %1974 = vmatprep.mubr.msk.bf16.mxu1 %vm790_vm5, %v2128_v44 }
 0x2b5   : > { %1972 = vmatprep.subr.bf16.mxu1 %v750_v1  ;;  %v1077_v14 = vpop.trf.xlu1 }
 0x2b8   : > { %1973 = vmatpush3.bf16.msra.mxu1 %v750_v1 }
 0x2b9   : > { %1982 = vmatprep.subr.bf16.mxu1 %v753_v61 }
 0x2bb   : > { %1975 = vmatmul.mubr.msk.bf16.vlgmr.msra.gmra.mxu1 %vm790_vm5, %v2129_v24 }
 0x2bc   : > { %1978 = vmatprep.mubr.msk.bf16.mxu1 %vm790_vm5, %v2130_v5  ;;  %1983 = vmatpush3.bf16.msra.mxu1 %v753_v61 }
 0x2bd   : > { %1984 = vmatprep.subr.bf16.mxu1 %v752_v62 }
 0x2c0   : > { %1985 = vmatpush3.bf16.msra.mxu1 %v752_v62 }
 0x2c1   : > { %1986 = vmatprep.subr.bf16.mxu1 %v751_v2 }
 0x2c3   : > { %1979 = vmatmul.mubr.msk.bf16.gmra.mxu1 %vm790_vm5, %v2131_v7 }
 0x2c4   : > { %1987 = vmatpush3.bf16.msra.mxu1 %v751_v2  ;;  %1990 = vmatprep.mubr.msk.bf16.mxu1 %vm790_vm5, %v1074_v26 }
 0x2c5   : > { %1988 = vmatprep.subr.bf16.mxu1 %v750_v1 }
 0x2c8   : > { %1989 = vmatpush3.bf16.msra.mxu1 %v750_v1 }
 0x2c9   : > { %v2086_v22 = vpop.permute.xlu1 %2085 }
 0x2ca   : > { %v2088_v16 = vunpack.i.h.bf16 %v2086_v22 }
 0x2cb   : > { %1991 = vmatmul.mubr.msk.bf16.vlgmr.msra.gmra.mxu1 %vm790_vm5, %v1075_v12  ;;  %v2087_v12 = vunpack.i.l.bf16 %v2086_v22 }
 0x2cc   : > { %1994 = vmatprep.mubr.msk.bf16.mxu1 %vm790_vm5, %v1076_v13 }
 0x2d3   : > { %1995 = vmatmul.mubr.msk.bf16.gmra.mxu1 %vm790_vm5, %v1077_v14 }
 0x317   : > { %v2600_v33 = vpop.f32.mrf.mxu1 }
 0x319   : > { %v2602_v34 = vpop.f32.mrf.mxu1 }
 0x31b   : > { %v2604_v35 = vpop.f32.mrf.mxu1 }
 0x31d   : > { %v2606_v36 = vpop.f32.mrf.mxu1 }
 0x31f   : > { %v2608_v28 = vpop.f32.mrf.mxu1 }
 0x321   : > { %v2610_v38 = vpop.f32.mrf.mxu1 }
 0x323   : > { %v2612_v45 = vpop.f32.mrf.mxu1 }
 0x325   : > { %v2617_v37 = vpop.f32.mrf.mxu1 }
 0x36b   : > { %v1960_v29 = vpop.f32.mrf.mxu1 }
 0x36d   : > { %v934_v50 = vpop.f32.mrf.mxu1 }
 0x36f   : > { %v1961_v51 = vpop.f32.mrf.mxu1 }
 0x370   : > { %v2094_v24 = vpack.i.bf16 %v1961_v51, %v1960_v29 }
 0x371   : > { %v937_v54 = vpop.f32.mrf.mxu1 }
 0x372   : > { %v2079_v43 = vpack.i.bf16 %v937_v54, %v934_v50 }
 0x373   : > { %v1964_v56 = vpop.f32.mrf.mxu1 }
 0x374   : > { %2080 = vrot.lane.b32.xlu0 %v2079_v43, %s2196_s15 }
 0x375   : > { %v950_v57 = vpop.f32.mrf.mxu1 }
 0x377   : > { %v1965_v41 = vpop.f32.mrf.mxu1 }
 0x378   : > { %2100 = vrot.lane.b32.xlu0 %v2099_v39, %s2194_s9 }
 0x379   : > { %v953_v61 = vpop.f32.mrf.mxu1 }
 0x37a   : > { %v2109_v62 = vpack.i.bf16 %v953_v61, %v950_v57 }
 0x37b   : > { %v1976_v44 = vpop.f32.mrf.mxu1 }
 0x37c   : > { %2110 = vrot.lane.b32.xlu0 %v2109_v62, %s2196_s15 }
 0x37d   : > { %v1031_v63 = vpop.f32.mrf.mxu1 }
 0x37f   : > { %v1977_v42 = vpop.f32.mrf.mxu1 }
 0x380   : > { %v2104_v7 = vpack.i.bf16 %v1977_v42, %v1976_v44 }
 0x381   : > { %v1034_v0 = vpop.f32.mrf.mxu1 }
 0x382   : > { %v2089_v2 = vpack.i.bf16 %v1034_v0, %v1031_v63 }
 0x383   : > { %v1980_v3 = vpop.f32.mrf.mxu1 }
 0x384   : > { %2090 = vrot.lane.b32.xlu1 %v2089_v2, %s2197_s16 }
 0x385   : > { %v1047_v4 = vpop.f32.mrf.mxu1 }
 0x387   : > { %v1981_v1 = vpop.f32.mrf.mxu1 }
 0x388   : > { %2095 = vrot.lane.b32.xlu1 %v2094_v24, %s2196_s15 }
 0x389   : > { %v1050_v5 = vpop.f32.mrf.mxu1 }
 0x38a   : > { %v2119_v8 = vpack.i.bf16 %v1050_v5, %v1047_v4 }
 0x38b   : > { %v1992_v9 = vpop.f32.mrf.mxu1 }
 0x38c   : > { %2105 = vrot.lane.b32.xlu1 %v2104_v7, %s2197_s16  ;;  %2120 = vrot.lane.b32.xlu0 %v2119_v8, %s2197_s16 }
 0x38d   : > { %v1128_v11 = vpop.f32.mrf.mxu1 }
 0x38e   : > { %1859 = vmatprep.mubr.msk.f32.mxu0 %vm1255_vm0, %v1128_v11 }
 0x38f   : > { %v1993_v6 = vpop.f32.mrf.mxu1 }
 0x390   : > { %2115 = vrot.lane.b32.xlu1 %v2114_v10, %s2194_s9  ;;  %1211 = vrot.lane.b32.xlu0 %v2511_v58, %s2194_s9 }
 0x391   : > { %v1131_v20 = vpop.f32.mrf.mxu1 }
 0x394   : > { %1179 = vrot.lane.b32.xlu1 %v1964_v56, %s2196_s15  ;;  %1181 = vrot.lane.b32.xlu0 %v1965_v41, %s2196_s15 }
 0x398   : > { %1243 = vrot.lane.b32.xlu1 %v1980_v3, %s2197_s16  ;;  %1245 = vrot.lane.b32.xlu0 %v1981_v1, %s2197_s16 }
 0x39c   : > { %1213 = vrot.lane.b32.xlu1 %v2513_v59, %s2194_s9 }
 0x3e6   : > { %v2081_v26 = vpop.permute.xlu0 %2080 }
 0x3e7   : > { %v2082_v60 = vunpack.i.l.bf16 %v2081_v26  ;;  %v2083_v13 = vunpack.i.h.bf16 %v2081_v26  ;;  %v1858_v26 = vld [vmem:[%s1303_s19] ss:$0 sm:$0xff] }
 0x3e9   : > { %v1256_v14 = vsel %vm1255_vm0, %v2602_v34, %v2082_v60  ;;  %v1257_v59 = vsel %vm1255_vm0, %v2606_v36, %v2083_v13  ;;  %v1996_v34 = vpop.f32.mrf.mxu1 }
 0x3ea   : > { %v2101_v17 = vpop.permute.xlu0 %2100  ;;  %v1264_v18 = vsel %vm790_vm5, %v1256_v14, %v2087_v12  ;;  %v1265_v27 = vsel %vm790_vm5, %v1257_v59, %v2088_v16 }
 0x3eb   : > { %v2102_v25 = vunpack.i.l.bf16 %v2101_v17  ;;  %v2103_v50 = vunpack.i.h.bf16 %v2101_v17  ;;  %v1144_v51 = vpop.f32.mrf.mxu1 }
 0x3ed   : > { %v1997_v57 = vpop.f32.mrf.mxu1 }
 0x3ee   : > { %v2111_v29 = vpop.permute.xlu0 %2110 }
 0x3ef   : > { %v2112_v52 = vunpack.i.l.bf16 %v2111_v29  ;;  %v2113_v32 = vunpack.i.h.bf16 %v2111_v29  ;;  %v1147_v42 = vpop.f32.mrf.mxu1 }
 0x3f1   : > { %v1260_v61 = vsel %vm1255_vm0, %v2610_v38, %v2112_v52  ;;  %v1261_v3 = vsel %vm1255_vm0, %v2617_v37, %v2113_v32 }
 0x3f6   : > { %v2091_v15 = vpop.permute.xlu1 %2090 }
 0x3f7   : > { %v2092_v58 = vunpack.i.l.bf16 %v2091_v15  ;;  %v2093_v31 = vunpack.i.h.bf16 %v2091_v15 }
 0x3f9   : > { %v1273_v19 = vsel %vm1272_vm6, %v1264_v18, %v2092_v58  ;;  %v1274_v47 = vsel %vm1272_vm6, %v1265_v27, %v2093_v31 }
 0x3fa   : > { %v2096_v21 = vpop.permute.xlu1 %2095  ;;  %1400 = vmatmul.mubr.f32.vlgmr.msra.gmra.mxu0 %v1273_v19 }
 0x3fb   : > { %v2097_v23 = vunpack.i.l.bf16 %v2096_v21  ;;  %1860 = vmatprep.mubr.msk.f32.mxu0 %vm1255_vm0, %v1131_v20  ;;  %v2098_v46 = vunpack.i.h.bf16 %v2096_v21 }
 0x3fd   : > { %v1258_v48 = vsel %vm1255_vm0, %v2600_v33, %v2097_v23  ;;  %v1259_v43 = vsel %vm1255_vm0, %v2604_v35, %v2098_v46 }
 0x3fe   : > { %v2106_v49 = vpop.permute.xlu1 %2105  ;;  %1405 = vmatmul.mubr.f32.gmra.mxu0 %v1274_v47  ;;  %v1266_v30 = vsel %vm790_vm5, %v1258_v48, %v2102_v25  ;;  %v2121_v55 = vpop.permute.xlu0 %2120  ;;  %v1267_v39 = vsel %vm790_vm5, %v1259_v43, %v2103_v50 }
 0x3ff   : > { %v2107_v36 = vunpack.i.l.bf16 %v2106_v49  ;;  %1861 = vmatprep.mubr.msk.f32.mxu0 %vm1255_vm0, %v1992_v9  ;;  %v2108_v53 = vunpack.i.h.bf16 %v2106_v49  ;;  %v2122_v41 = vunpack.i.l.bf16 %v2121_v55  ;;  %v2123_v0 = vunpack.i.h.bf16 %v2121_v55 }
 0x401   : > { %v1275_v54 = vsel %vm1272_vm6, %v1266_v30, %v2107_v36  ;;  %v1276_v40 = vsel %vm1272_vm6, %v1267_v39, %v2108_v53 }
 0x402   : > { %v2116_v56 = vpop.permute.xlu1 %2115  ;;  %1410 = vmatmul.mubr.f32.gmra.mxu0 %v1275_v54  ;;  %v1212_v63 = vpop.permute.xlu0 %1211 }
 0x403   : > { %v2117_v33 = vunpack.i.l.bf16 %v2116_v56  ;;  %1862 = vmatprep.mubr.msk.f32.mxu0 %vm1255_vm0, %v1993_v6  ;;  %v2118_v62 = vunpack.i.h.bf16 %v2116_v56 }
 0x405   : > { %v1268_v35 = vsel %vm790_vm5, %v1260_v61, %v2117_v33  ;;  %v1269_v24 = vsel %vm790_vm5, %v1261_v3, %v2118_v62 }
 0x406   : > { %v1180_v44 = vpop.permute.xlu1 %1179  ;;  %1415 = vmatmul.mubr.f32.gmra.mxu0 %v1276_v40  ;;  %v1277_v2 = vsel %vm1272_vm6, %v1268_v35, %v2122_v41  ;;  %v1278_v1 = vsel %vm1272_vm6, %v1269_v24, %v2123_v0  ;;  %v1182_v5 = vpop.permute.xlu0 %1181 }
 0x407   : > { %1863 = vmatprep.mubr.msk.f32.mxu0 %vm1255_vm0, %v1144_v51  ;;  %v1262_v38 = vsel %vm1255_vm0, %v2608_v28, %v1180_v44  ;;  %v1263_v37 = vsel %vm1255_vm0, %v2612_v45, %v1182_v5 }
 0x408   : > { %v1270_v8 = vsel %vm790_vm5, %v1262_v38, %v1212_v63 }
 0x40a   : > { %v1244_v4 = vpop.permute.xlu1 %1243  ;;  %1420 = vmatmul.mubr.f32.gmra.mxu0 %v1277_v2  ;;  %v1246_v28 = vpop.permute.xlu0 %1245 }
 0x40b   : > { %1864 = vmatprep.mubr.msk.f32.mxu0 %vm1255_vm0, %v1147_v42  ;;  %v1279_v9 = vsel %vm1272_vm6, %v1270_v8, %v1244_v4 }
 0x40e   : > { %1425 = vmatmul.mubr.f32.gmra.mxu0 %v1278_v1  ;;  %v1214_v7 = vpop.permute.xlu1 %1213 }
 0x40f   : > { %1865 = vmatprep.mubr.msk.f32.mxu0 %vm1255_vm0, %v1996_v34  ;;  %v1271_v10 = vsel %vm790_vm5, %v1263_v37, %v1214_v7 }
 0x410   : > { %v1280_v11 = vsel %vm1272_vm6, %v1271_v10, %v1246_v28 }
 0x412   : > { %1430 = vmatmul.mubr.f32.gmra.mxu0 %v1279_v9 }
 0x413   : > { %1866 = vmatprep.mubr.msk.f32.mxu0 %vm1255_vm0, %v1997_v57 }
 0x416   : > { %1435 = vmatmul.mubr.f32.gmra.mxu0 %v1280_v11 }
 0x4ba   : > { %v1401_v60 = vpop.f32.mrf.mxu0 }
 0x4bb   : > { %v1402_v22 = vadd.f32 %v1858_v26, %v1401_v60 }
 0x4bc   : > { %v1403_v45 = vpop.f32.mrf.mxu0 }
 0x4bd   : > { %2132 = vtanh.f32 %v1402_v22 }
 0x4be   : > { %v1406_v12 = vpop.f32.mrf.mxu0 }
 0x4bf   : > { %v1407_v13 = vadd.f32 %v1858_v26, %v1406_v12 }
 0x4c0   : > { %v1408_v14 = vpop.f32.mrf.mxu0 }
 0x4c1   : > { %2134 = vtanh.f32 %v1407_v13 }
 0x4c2   : > { %v1411_v6 = vpop.f32.mrf.mxu0 }
 0x4c3   : > { %v1412_v15 = vadd.f32 %v1858_v26, %v1411_v6 }
 0x4c4   : > { %v1413_v58 = vpop.f32.mrf.mxu0 }
 0x4c5   : > { %2136 = vtanh.f32 %v1412_v15 }
 0x4c6   : > { %v1416_v16 = vpop.f32.mrf.mxu0 }
 0x4c7   : > { %v1417_v17 = vadd.f32 %v1858_v26, %v1416_v16 }
 0x4c8   : > { %v1418_v18 = vpop.f32.mrf.mxu0 }
 0x4c9   : > { %2138 = vtanh.f32 %v1417_v17 }
 0x4ca   : > { %v2695_v31 = vpop.eup %2132  ;;  %v1421_v19 = vpop.f32.mrf.mxu0 }
 0x4cb   : > { %v1448_v59 = vmul.f32 %v2695_v31, %v2695_v31  ;;  %v1422_v25 = vadd.f32 %v1858_v26, %v1421_v19 }
 0x4cc   : > { %v1423_v20 = vpop.f32.mrf.mxu0 }
 0x4cd   : > { %1464 = vrot.lane.b32.xlu1 %v1448_v59, %s2198_s20  ;;  %2140 = vtanh.f32 %v1422_v25 }
 0x4ce   : > { %v2700_v21 = vpop.eup %2134  ;;  %v1426_v23 = vpop.f32.mrf.mxu0 }
 0x4cf   : > { %v1449_v27 = vmul.f32 %v2700_v21, %v2700_v21  ;;  %v1427_v47 = vadd.f32 %v1858_v26, %v1426_v23 }
 0x4d0   : > { %v1428_v34 = vpop.f32.mrf.mxu0 }
 0x4d1   : > { %1466 = vrot.lane.b32.xlu0 %v1449_v27, %s2198_s20  ;;  %1496 = vrot.lane.b32.xlu1 %v1448_v59, %s2199_s21  ;;  %2142 = vtanh.f32 %v1427_v47 }
 0x4d2   : > { %v1431_v46 = vpop.f32.mrf.mxu0  ;;  %v2706_v48 = vpop.eup %2136 }
 0x4d3   : > { %v1450_v36 = vmul.f32 %v2706_v48, %v2706_v48  ;;  %v1432_v51 = vadd.f32 %v1858_v26, %v1431_v46 }
 0x4d4   : > { %v1433_v29 = vpop.f32.mrf.mxu0 }
 0x4d5   : > { %1498 = vrot.lane.b32.xlu0 %v1449_v27, %s2199_s21  ;;  %1528 = vrot.lane.b32.xlu1 %v1448_v59, %s2200_s22  ;;  %2144 = vtanh.f32 %v1432_v51 }
 0x4d6   : > { %v1436_v49 = vpop.f32.mrf.mxu0  ;;  %v2712_v50 = vpop.eup %2138 }
 0x4d7   : > { %v1451_v52 = vmul.f32 %v2712_v50, %v2712_v50  ;;  %v1437_v53 = vadd.f32 %v1858_v26, %v1436_v49 }
 0x4d8   : > { %v1438_v30 = vpop.f32.mrf.mxu0 }
 0x4d9   : > { %1530 = vrot.lane.b32.xlu0 %v1449_v27, %s2200_s22  ;;  %1468 = vrot.lane.b32.xlu1 %v1450_v36, %s2198_s20  ;;  %2146 = vtanh.f32 %v1437_v53 }
 0x4da   : > { %v2720_v54 = vpop.eup %2140 }
 0x4db   : > { %v1452_v43 = vmul.f32 %v2720_v54, %v2720_v54 }
 0x4dd   : > { %1470 = vrot.lane.b32.xlu0 %v1451_v52, %s2198_s20  ;;  %1500 = vrot.lane.b32.xlu1 %v1450_v36, %s2199_s21 }
 0x4de   : > { %v2726_v55 = vpop.eup %2142 }
 0x4df   : > { %v2732_v56 = vmul.f32 %v2726_v55, %v2726_v55 }
 0x4e1   : > { %1502 = vrot.lane.b32.xlu0 %v1451_v52, %s2199_s21  ;;  %1532 = vrot.lane.b32.xlu1 %v1450_v36, %s2200_s22 }
 0x4e2   : > { %v2737_v33 = vpop.eup %2144 }
 0x4e3   : > { %v2744_v39 = vmul.f32 %v2737_v33, %v2737_v33 }
 0x4e5   : > { %1534 = vrot.lane.b32.xlu0 %v1451_v52, %s2200_s22  ;;  %1472 = vrot.lane.b32.xlu1 %v1452_v43, %s2198_s20 }
 0x4e6   : > { %v2746_v57 = vpop.eup %2146 }
 0x4e7   : > { %v2754_v32 = vmul.f32 %v2746_v57, %v2746_v57 }
 0x4e9   : > { %1474 = vrot.lane.b32.xlu0 %v2732_v56, %s2198_s20  ;;  %1504 = vrot.lane.b32.xlu1 %v1452_v43, %s2199_s21 }
 0x4ed   : > { %1506 = vrot.lane.b32.xlu0 %v2732_v56, %s2199_s21  ;;  %1536 = vrot.lane.b32.xlu1 %v1452_v43, %s2200_s22 }
 0x4f1   : > { %1538 = vrot.lane.b32.xlu0 %v2732_v56, %s2200_s22  ;;  %1476 = vrot.lane.b32.xlu1 %v2744_v39, %s2198_s20 }
 0x4f5   : > { %1478 = vrot.lane.b32.xlu0 %v2754_v32, %s2198_s20  ;;  %1508 = vrot.lane.b32.xlu1 %v2744_v39, %s2199_s21 }
 0x4f9   : > { %1510 = vrot.lane.b32.xlu0 %v2754_v32, %s2199_s21  ;;  %1540 = vrot.lane.b32.xlu1 %v2744_v39, %s2200_s22 }
 0x4fd   : > { %1542 = vrot.lane.b32.xlu0 %v2754_v32, %s2200_s22 }
 0x53f   : > { %v1465_v41 = vpop.permute.xlu1 %1464 }
 0x540   : > { %v1488_v62 = vadd.f32 %v1465_v41, %v1448_v59 }
 0x543   : > { %v1467_v40 = vpop.permute.xlu0 %1466  ;;  %v1497_v61 = vpop.permute.xlu1 %1496 }
 0x544   : > { %v1520_v44 = vadd.f32 %v1497_v61, %v1488_v62  ;;  %v1489_v42 = vadd.f32 %v1467_v40, %v1449_v27 }
 0x547   : > { %v1499_v35 = vpop.permute.xlu0 %1498  ;;  %v1529_v63 = vpop.permute.xlu1 %1528 }
 0x548   : > { %v1552_v0 = vadd.f32 %v1529_v63, %v1520_v44  ;;  %v1521_v2 = vadd.f32 %v1499_v35, %v1489_v42 }
 0x54a   : > { %2148 = vrsqrt.f32 %v1552_v0  ;;  %vm1562_vm7 = vcmp.eq.f32.partialorder %v1552_v0, inf  ;;  %v1565_v12 = vand.u32 2147483648, %v1552_v0  ;;  %vm1564_vm8 = vcmp.eq.f32.partialorder %v1552_v0, 0.0 }
 0x54b   : > { %v1531_v3 = vpop.permute.xlu0 %1530  ;;  %v1469_v4 = vpop.permute.xlu1 %1468 }
 0x54c   : > { %v1553_v24 = vadd.f32 %v1531_v3, %v1521_v2  ;;  %v1490_v5 = vadd.f32 %v1469_v4, %v1450_v36 }
 0x54e   : > { %2150 = vrsqrt.f32 %v1553_v24  ;;  %vm1569_vm9 = vcmp.eq.f32.partialorder %v1553_v24, inf  ;;  %v1572_v19 = vand.u32 2147483648, %v1553_v24  ;;  %vm1571_vm10 = vcmp.eq.f32.partialorder %v1553_v24, 0.0 }
 0x54f   : > { %v1471_v38 = vpop.permute.xlu0 %1470  ;;  %v1501_v1 = vpop.permute.xlu1 %1500 }
 0x550   : > { %v1522_v7 = vadd.f32 %v1501_v1, %v1490_v5  ;;  %v1491_v9 = vadd.f32 %v1471_v38, %v1451_v52 }
 0x553   : > { %v1503_v8 = vpop.permute.xlu0 %1502  ;;  %v1533_v37 = vpop.permute.xlu1 %1532 }
 0x554   : > { %v1554_v10 = vadd.f32 %v1533_v37, %v1522_v7  ;;  %v1523_v28 = vadd.f32 %v1503_v8, %v1491_v9 }
 0x556   : > { %2152 = vrsqrt.f32 %v1554_v10  ;;  %vm1576_vm11 = vcmp.eq.f32.partialorder %v1554_v10, inf  ;;  %v1579_v53 = vand.u32 2147483648, %v1554_v10  ;;  %vm1578_vm12 = vcmp.eq.f32.partialorder %v1554_v10, 0.0 }
 0x557   : > { %v2149_v11 = vpop.eup %2148  ;;  %v1535_v26 = vpop.permute.xlu0 %1534 }
 0x558   : > { %v1473_v60 = vpop.permute.xlu1 %1472  ;;  %v1561_v22 = vmul.f32 %v2149_v11, %v1552_v0  ;;  %v1555_v45 = vadd.f32 %v1535_v26, %v1523_v28 }
 0x559   : > { %v1492_v18 = vadd.f32 %v1473_v60, %v1452_v43 }
 0x55a   : > { %v1563_v13 = vsel %vm1562_vm7, %v1552_v0, %v1561_v22  ;;  %2154 = vrsqrt.f32 %v1555_v45  ;;  %vm1583_vm13 = vcmp.eq.f32.partialorder %v1555_v45, inf  ;;  %v1586_v63 = vand.u32 2147483648, %v1555_v45 }
 0x55b   : > { %v2151_v14 = vpop.eup %2150  ;;  %v1566_v6 = vsel %vm1564_vm8, %v1565_v12, %v1563_v13  ;;  %v1475_v15 = vpop.permute.xlu0 %1474  ;;  %vm1585_vm14 = vcmp.eq.f32.partialorder %v1555_v45, 0.0  ;;  %vm1744_vm8 = vcmask 64512  }
 0x55c   : > { %v1505_v58 = vpop.permute.xlu1 %1504  ;;  %v1616_v16 = vmax.f32 %v1566_v6, 1e-12  ;;  %v1568_v17 = vmul.f32 %v2151_v14, %v1553_v24  ;;  %v1493_v46 = vadd.f32 %v1475_v15, %v2732_v56 }
 0x55d   : > { %v1524_v20 = vadd.f32 %v1505_v58, %v1492_v18 }
 0x55e   : > { %2156 = vrcp.f32 %v1616_v16  ;;  %v1570_v59 = vsel %vm1569_vm9, %v1553_v24, %v1568_v17  ;;  %vm1753_vm9 = vcmask 130048  }
 0x55f   : > { %v1573_v23 = vsel %vm1571_vm10, %v1572_v19, %v1570_v59  ;;  %v1507_v25 = vpop.permute.xlu0 %1506  ;;  %vm1762_vm10 = vcmask 195584  }
 0x560   : > { %v1537_v27 = vpop.permute.xlu1 %1536  ;;  %v1617_v34 = vmax.f32 %v1573_v23, 1e-12  ;;  %v1525_v29 = vadd.f32 %v1507_v25, %v1493_v46 }
 0x561   : > { %v1556_v47 = vadd.f32 %v1537_v27, %v1524_v20 }
 0x562   : > { %2158 = vrcp.f32 %v1617_v34 }
 0x563   : > { %v2153_v49 = vpop.eup %2152  ;;  %2160 = vrsqrt.f32 %v1556_v47  ;;  %v1539_v36 = vpop.permute.xlu0 %1538  ;;  %vm1590_vm15 = vcmp.eq.f32.partialorder %v1556_v47, inf  ;;  %vm1592_vm1 = vcmp.eq.f32.partialorder %v1556_v47, 0.0 }
 0x564   : > { %v1477_v30 = vpop.permute.xlu1 %1476  ;;  %v1575_v51 = vmul.f32 %v2153_v49, %v1554_v10  ;;  %v1557_v52 = vadd.f32 %v1539_v36, %v1525_v29 }
 0x565   : > { %v1494_v35 = vadd.f32 %v1477_v30, %v2744_v39 }
 0x566   : > { %v1577_v43 = vsel %vm1576_vm11, %v1554_v10, %v1575_v51  ;;  %2162 = vrsqrt.f32 %v1557_v52  ;;  %v1593_v10 = vand.u32 2147483648, %v1556_v47  ;;  %vm1597_vm2 = vcmp.eq.f32.partialorder %v1557_v52, inf }
 0x567   : > { %v2155_v41 = vpop.eup %2154  ;;  %v1580_v40 = vsel %vm1578_vm12, %v1579_v53, %v1577_v43  ;;  %v1479_v61 = vpop.permute.xlu0 %1478  ;;  %vm1599_vm3 = vcmp.eq.f32.partialorder %v1557_v52, 0.0 }
 0x568   : > { %v1509_v62 = vpop.permute.xlu1 %1508  ;;  %v1618_v44 = vmax.f32 %v1580_v40, 1e-12  ;;  %v1582_v56 = vmul.f32 %v2155_v41, %v1555_v45  ;;  %v1495_v1 = vadd.f32 %v1479_v61, %v2754_v32 }
 0x569   : > { %v1526_v0 = vadd.f32 %v1509_v62, %v1494_v35 }
 0x56a   : > { %2164 = vrcp.f32 %v1618_v44  ;;  %v1584_v42 = vsel %vm1583_vm13, %v1555_v45, %v1582_v56  ;;  %v1600_v45 = vand.u32 2147483648, %v1557_v52 }
 0x56b   : > { %v2768_v2 = vpop.eup %2156  ;;  %v1587_v3 = vsel %vm1585_vm14, %v1586_v63, %v1584_v42  ;;  %v1511_v4 = vpop.permute.xlu0 %1510 }
 0x56c   : > { %v1541_v24 = vpop.permute.xlu1 %1540  ;;  %v1619_v38 = vmax.f32 %v1587_v3, 1e-12  ;;  %1648 = vrot.lane.b32.xlu1 %v2768_v2, %s2201_s23  ;;  %v1527_v39 = vadd.f32 %v1511_v4, %v1495_v1  ;;  %v1632_v41 = vmul.f32 %v2768_v2, %v2695_v31 }
 0x56d   : > { %v1558_v5 = vadd.f32 %v1541_v24, %v1526_v0 }
 0x56e   : > { %2166 = vrcp.f32 %v1619_v38 }
 0x56f   : > { %v2773_v7 = vpop.eup %2158  ;;  %2168 = vrsqrt.f32 %v1558_v5  ;;  %v1543_v8 = vpop.permute.xlu0 %1542  ;;  %vm1604_vm4 = vcmp.eq.f32.partialorder %v1558_v5, inf  ;;  %v1607_v17 = vand.u32 2147483648, %v1558_v5  ;;  %vm1606_vm5 = vcmp.eq.f32.partialorder %v1558_v5, 0.0 }
 0x570   : > { %v2161_v37 = vpop.eup %2160  ;;  %v1559_v9 = vadd.f32 %v1543_v8, %v1527_v39  ;;  %1650 = vrot.lane.b32.xlu0 %v2773_v7, %s2201_s23  ;;  %1680 = vrot.lane.b32.xlu1 %v2768_v2, %s2202_s26  ;;  %v1633_v42 = vmul.f32 %v2773_v7, %v2700_v21 }
 0x571   : > { %v1589_v32 = vmul.f32 %v2161_v37, %v1556_v47 }
 0x572   : > { %2170 = vrsqrt.f32 %v1559_v9  ;;  %vm1611_vm6 = vcmp.eq.f32.partialorder %v1559_v9, inf  ;;  %v1614_v25 = vand.u32 2147483648, %v1559_v9  ;;  %vm1613_vm7 = vcmp.eq.f32.partialorder %v1559_v9, 0.0 }
 0x573   : > { %v2163_v28 = vpop.eup %2162  ;;  %v1591_v11 = vsel %vm1590_vm15, %v1556_v47, %v1589_v32 }
 0x574   : > { %v1594_v26 = vsel %vm1592_vm1, %v1593_v10, %v1591_v11  ;;  %v1596_v60 = vmul.f32 %v2163_v28, %v1557_v52  ;;  %1682 = vrot.lane.b32.xlu0 %v2773_v7, %s2202_s26  ;;  %1712 = vrot.lane.b32.xlu1 %v2768_v2, %s2203_s27 }
 0x575   : > { %v1620_v22 = vmax.f32 %v1594_v26, 1e-12 }
 0x576   : > { %v1598_v12 = vsel %vm1597_vm2, %v1557_v52, %v1596_v60 }
 0x577   : > { %v2783_v13 = vpop.eup %2164  ;;  %2172 = vrcp.f32 %v1620_v22  ;;  %v1601_v14 = vsel %vm1599_vm3, %v1600_v45, %v1598_v12 }
 0x578   : > { %v1621_v6 = vmax.f32 %v1601_v14, 1e-12  ;;  %1714 = vrot.lane.b32.xlu0 %v2773_v7, %s2203_s27  ;;  %1652 = vrot.lane.b32.xlu1 %v2783_v13, %s2201_s23  ;;  %v1634_v8 = vmul.f32 %v2783_v13, %v2706_v48 }
 0x57a   : > { %2174 = vrcp.f32 %v1621_v6 }
 0x57b   : > { %v2789_v15 = vpop.eup %2166 }
 0x57c   : > { %v2169_v58 = vpop.eup %2168  ;;  %1654 = vrot.lane.b32.xlu0 %v2789_v15, %s2201_s23  ;;  %1684 = vrot.lane.b32.xlu1 %v2783_v13, %s2202_s26  ;;  %v1635_v26 = vmul.f32 %v2789_v15, %v2712_v50 }
 0x57d   : > { %v1603_v16 = vmul.f32 %v2169_v58, %v1558_v5 }
 0x57f   : > { %v2171_v18 = vpop.eup %2170  ;;  %v1605_v19 = vsel %vm1604_vm4, %v1558_v5, %v1603_v16 }
 0x580   : > { %v1608_v59 = vsel %vm1606_vm5, %v1607_v17, %v1605_v19  ;;  %v1610_v20 = vmul.f32 %v2171_v18, %v1559_v9  ;;  %1686 = vrot.lane.b32.xlu0 %v2789_v15, %s2202_s26  ;;  %1716 = vrot.lane.b32.xlu1 %v2783_v13, %s2203_s27 }
 0x581   : > { %v1622_v23 = vmax.f32 %v1608_v59, 1e-12 }
 0x582   : > { %v1612_v27 = vsel %vm1611_vm6, %v1559_v9, %v1610_v20 }
 0x583   : > { %2176 = vrcp.f32 %v1622_v23  ;;  %v1615_v34 = vsel %vm1613_vm7, %v1614_v25, %v1612_v27 }
 0x584   : > { %v2799_v46 = vpop.eup %2172  ;;  %v1623_v47 = vmax.f32 %v1615_v34, 1e-12  ;;  %1718 = vrot.lane.b32.xlu0 %v2789_v15, %s2203_s27 }
 0x585   : > { %1656 = vrot.lane.b32.xlu1 %v2799_v46, %s2201_s23  ;;  %v1636_v17 = vmul.f32 %v2799_v46, %v2720_v54 }
 0x586   : > { %2178 = vrcp.f32 %v1623_v47 }
 0x587   : > { %v2805_v29 = vpop.eup %2174 }
 0x588   : > { %1658 = vrot.lane.b32.xlu0 %v2805_v29, %s2201_s23  ;;  %v1637_v25 = vmul.f32 %v2805_v29, %v2726_v55 }
 0x589   : > { %1688 = vrot.lane.b32.xlu1 %v2799_v46, %s2202_s26 }
 0x58c   : > { %1690 = vrot.lane.b32.xlu0 %v2805_v29, %s2202_s26 }
 0x58d   : > { %1720 = vrot.lane.b32.xlu1 %v2799_v46, %s2203_s27 }
 0x590   : > { %v2815_v49 = vpop.eup %2176  ;;  %1722 = vrot.lane.b32.xlu0 %v2805_v29, %s2203_s27 }
 0x591   : > { %1660 = vrot.lane.b32.xlu1 %v2815_v49, %s2201_s23 }
 0x593   : > { %v2821_v36 = vpop.eup %2178 }
 0x594   : > { %1662 = vrot.lane.b32.xlu0 %v2821_v36, %s2201_s23 }
 0x595   : > { %1692 = vrot.lane.b32.xlu1 %v2815_v49, %s2202_s26 }
 0x598   : > { %1694 = vrot.lane.b32.xlu0 %v2821_v36, %s2202_s26 }
 0x599   : > { %1724 = vrot.lane.b32.xlu1 %v2815_v49, %s2203_s27 }
 0x59c   : > { %1726 = vrot.lane.b32.xlu0 %v2821_v36, %s2203_s27 }
 0x5de   : > { %v1649_v30 = vpop.permute.xlu1 %1648 }
 0x5df   : > { %v1672_v53 = vmul.f32 %v2695_v31, %v1649_v30 }
 0x5e1   : > { %v1745_v62 = vsel %vm1744_vm8, %v1632_v41, %v1672_v53 }
 0x5e2   : > { %v1651_v51 = vpop.permute.xlu0 %1650  ;;  %v1681_v52 = vpop.permute.xlu1 %1680 }
 0x5e3   : > { %v1704_v43 = vmul.f32 %v2695_v31, %v1681_v52  ;;  %v1673_v44 = vmul.f32 %v2700_v21, %v1651_v51 }
 0x5e5   : > { %v1754_v35 = vsel %vm1753_vm9, %v1745_v62, %v1704_v43  ;;  %v1746_v4 = vsel %vm1744_vm8, %v1633_v42, %v1673_v44 }
 0x5e6   : > { %v1683_v40 = vpop.permute.xlu0 %1682  ;;  %v1713_v61 = vpop.permute.xlu1 %1712 }
 0x5e7   : > { %v1736_v56 = vmul.f32 %v2695_v31, %v1713_v61  ;;  %v1705_v63 = vmul.f32 %v2700_v21, %v1683_v40  ;;  %v1638_v40 = vmul.f32 %v2815_v49, %v2737_v33 }
 0x5e9   : > { %v1763_v0 = vsel %vm1762_vm10, %v1754_v35, %v1736_v56  ;;  %v1755_v38 = vsel %vm1753_vm9, %v1746_v4, %v1705_v63  ;;  %v1639_v63 = vmul.f32 %v2821_v36, %v2746_v57 }
 0x5ea   : > { %1771 = vst.msk [vmem:[#allocation2] sm:$0xff] %vm1255_vm0, %v1763_v0  ;;  %v1715_v2 = vpop.permute.xlu0 %1714  ;;  %v1653_v3 = vpop.permute.xlu1 %1652 }
 0x5eb   : > { %v1737_v24 = vmul.f32 %v2700_v21, %v1715_v2  ;;  %v1674_v39 = vmul.f32 %v2706_v48, %v1653_v3 }
 0x5ed   : > { %v1764_v31 = vsel %vm1762_vm10, %v1755_v38, %v1737_v24  ;;  %v1747_v32 = vsel %vm1744_vm8, %v1634_v8, %v1674_v39 }
 0x5ee   : > { %1772 = vst.msk [vmem:[#allocation2 + $0x8] sm:$0xff] %vm1255_vm0, %v1764_v31  ;;  %v1655_v1 = vpop.permute.xlu0 %1654  ;;  %v1685_v5 = vpop.permute.xlu1 %1684 }
 0x5ef   : > { %v1706_v7 = vmul.f32 %v2706_v48, %v1685_v5  ;;  %v1675_v21 = vmul.f32 %v2712_v50, %v1655_v1 }
 0x5f1   : > { %v1756_v28 = vsel %vm1753_vm9, %v1747_v32, %v1706_v7  ;;  %v1748_v45 = vsel %vm1744_vm8, %v1635_v26, %v1675_v21 }
 0x5f2   : > { %v1687_v37 = vpop.permute.xlu0 %1686  ;;  %v1717_v9 = vpop.permute.xlu1 %1716 }
 0x5f3   : > { %v1738_v10 = vmul.f32 %v2706_v48, %v1717_v9  ;;  %v1707_v11 = vmul.f32 %v2712_v50, %v1687_v37 }
 0x5f5   : > { %v1765_v60 = vsel %vm1762_vm10, %v1756_v28, %v1738_v10  ;;  %v1757_v14 = vsel %vm1753_vm9, %v1748_v45, %v1707_v11 }
 0x5f6   : > { %1773 = vst.msk [vmem:[#allocation2 + $0x10] sm:$0xff] %vm1255_vm0, %v1765_v60  ;;  %v1719_v22 = vpop.permute.xlu0 %1718 }
 0x5f7   : > { %v1739_v12 = vmul.f32 %v2712_v50, %v1719_v22  ;;  %v1657_v13 = vpop.permute.xlu1 %1656 }
 0x5f8   : > { %v1676_v15 = vmul.f32 %v2720_v54, %v1657_v13 }
 0x5f9   : > { %v1766_v48 = vsel %vm1762_vm10, %v1757_v14, %v1739_v12 }
 0x5fa   : > { %1774 = vst.msk [vmem:[#allocation2 + $0x18] sm:$0xff] %vm1255_vm0, %v1766_v48  ;;  %v1659_v6 = vpop.permute.xlu0 %1658  ;;  %v1749_v59 = vsel %vm1744_vm8, %v1636_v17, %v1676_v15 }
 0x5fb   : > { %v1689_v58 = vpop.permute.xlu1 %1688  ;;  %v1677_v19 = vmul.f32 %v2726_v55, %v1659_v6 }
 0x5fc   : > { %v1708_v16 = vmul.f32 %v2720_v54, %v1689_v58 }
 0x5fd   : > { %v1750_v46 = vsel %vm1744_vm8, %v1637_v25, %v1677_v19 }
 0x5fe   : > { %v1691_v18 = vpop.permute.xlu0 %1690  ;;  %v1758_v27 = vsel %vm1753_vm9, %v1749_v59, %v1708_v16 }
 0x5ff   : > { %v1721_v50 = vpop.permute.xlu1 %1720  ;;  %v1709_v20 = vmul.f32 %v2726_v55, %v1691_v18 }
 0x600   : > { %v1740_v23 = vmul.f32 %v2720_v54, %v1721_v50 }
 0x601   : > { %v1759_v52 = vsel %vm1753_vm9, %v1750_v46, %v1709_v20 }
 0x602   : > { %v1767_v34 = vsel %vm1762_vm10, %v1758_v27, %v1740_v23  ;;  %v1723_v47 = vpop.permute.xlu0 %1722 }
 0x603   : > { %1775 = vst.msk [vmem:[#allocation2 + $0x20] sm:$0xff] %vm1255_vm0, %v1767_v34  ;;  %v1741_v30 = vmul.f32 %v2726_v55, %v1723_v47  ;;  %v1661_v51 = vpop.permute.xlu1 %1660 }
 0x604   : > { %v1678_v43 = vmul.f32 %v2737_v33, %v1661_v51 }
 0x605   : > { %v1768_v53 = vsel %vm1762_vm10, %v1759_v52, %v1741_v30 }
 0x606   : > { %1776 = vst.msk [vmem:[#allocation2 + $0x28] sm:$0xff] %vm1255_vm0, %v1768_v53  ;;  %v1663_v54 = vpop.permute.xlu0 %1662  ;;  %v1751_v44 = vsel %vm1744_vm8, %v1638_v40, %v1678_v43 }
 0x607   : > { %v1693_v29 = vpop.permute.xlu1 %1692  ;;  %v1679_v62 = vmul.f32 %v2746_v57, %v1663_v54 }
 0x608   : > { %v1710_v41 = vmul.f32 %v2737_v33, %v1693_v29 }
 0x609   : > { %v1752_v49 = vsel %vm1744_vm8, %v1639_v63, %v1679_v62 }
 0x60a   : > { %v1695_v61 = vpop.permute.xlu0 %1694  ;;  %v1760_v42 = vsel %vm1753_vm9, %v1751_v44, %v1710_v41 }
 0x60b   : > { %v1725_v55 = vpop.permute.xlu1 %1724  ;;  %v1711_v56 = vmul.f32 %v2746_v57, %v1695_v61 }
 0x60c   : > { %v1742_v35 = vmul.f32 %v2737_v33, %v1725_v55 }
 0x60d   : > { %v1761_v4 = vsel %vm1753_vm9, %v1752_v49, %v1711_v56 }
 0x60e   : > { %v1769_v0 = vsel %vm1762_vm10, %v1760_v42, %v1742_v35  ;;  %v1727_v2 = vpop.permute.xlu0 %1726 }
 0x60f   : > { %1777 = vst.msk [vmem:[#allocation2 + $0x30] sm:$0xff] %vm1255_vm0, %v1769_v0  ;;  %v1743_v3 = vmul.f32 %v2746_v57, %v1727_v2 }
 0x611   : > { %v1770_v24 = vsel %vm1762_vm10, %v1761_v4, %v1743_v3 }
 0x612   : > { %1778 = vst.msk [vmem:[#allocation2 + $0x38] sm:$0xff] %vm1255_vm0, %v1770_v24 }
 0x613 PF: > { %p1867_p5 = scmp.ne.s32.totalorder %s2250_s25, 2 }
 0x615   : > { %1782 = sbr.rel (%p1867_p5) target bundleno = 1567 (0x61f), region = 60 }
 0x61a   : > { %v1783_v33 = vld [vmem:[#allocation2] sm:$0xff]  ;;  %vm1791_vm11 = vcmask 261120   ;;  %v1784_v36 = vld [vmem:[#allocation2 + $0x8] sm:$0xff]  ;;  %v1785_v38 = vld [vmem:[#allocation2 + $0x10] sm:$0xff] }
 0x61b   : > { %1792 = vst.msk [vmem:[%s2940_s7] sm:$0xff] %vm1791_vm11, %v1783_v33  ;;  %1793 = vst.msk [vmem:[%s2940_s7 + $0x8] sm:$0xff] %vm1791_vm11, %v1784_v36  ;;  %v1786_v57 = vld [vmem:[#allocation2 + $0x18] sm:$0xff]  ;;  %v1787_v31 = vld [vmem:[#allocation2 + $0x20] sm:$0xff] }
 0x61c   : > { %1794 = vst.msk [vmem:[%s2940_s7 + $0x10] sm:$0xff] %vm1791_vm11, %v1785_v38  ;;  %v1788_v1 = vld [vmem:[#allocation2 + $0x28] sm:$0xff]  ;;  %1795 = vst.msk [vmem:[%s2940_s7 + $0x18] sm:$0xff] %vm1791_vm11, %v1786_v57  ;;  %v1789_v5 = vld [vmem:[#allocation2 + $0x30] sm:$0xff] }
 0x61d   : > { %1796 = vst.msk [vmem:[%s2940_s7 + $0x20] sm:$0xff] %vm1791_vm11, %v1787_v31  ;;  %1797 = vst.msk [vmem:[%s2940_s7 + $0x28] sm:$0xff] %vm1791_vm11, %v1788_v1  ;;  %v1790_v39 = vld [vmem:[#allocation2 + $0x38] sm:$0xff] }
 0x61e   : > { %1798 = vst.msk [vmem:[%s2940_s7 + $0x30] sm:$0xff] %vm1791_vm11, %v1789_v5  ;;  %1799 = vst.msk [vmem:[%s2940_s7 + $0x38] sm:$0xff] %vm1791_vm11, %v1790_v39 }
 0x61f PF: > { %s17_s24 = sadd.s32 1, %s2186_s24  }
 0x620   : > { %p14_p6 = scmp.ge.s32.totalorder %s17_s24, 5  }
 0x622   :  { %16 = sbr.rel (!%p14_p6) target bundleno = 1 (0x1), region = 85 }

</bundles_post_ra>
